<compile_context>
chip_gen: v5e
topology: v5e:2x2
jax: 0.10.0
libtpu: 0.0.40
codegen_flags: <defaults>
</compile_context>

<pallas_src>
import numpy as np
import jax
import jax.numpy as jnp
from jax.experimental import pallas as pl
from jax.experimental.pallas import tpu as pltpu

BN_EPS = 1e-5


def _round_up(x, m):
    return ((x + m - 1) // m) * m


def _bn_scale_shift(gamma, beta, mean, var):
    scale = gamma / jnp.sqrt(var + BN_EPS)
    shift = beta - mean * scale
    return scale, shift


# ----------------------------------------------------------------------------
# One-time weight preparation (NOT in the per-call jitted path).
# ----------------------------------------------------------------------------
def prepare_params(p, num_classes):
    H = p["lex_w_hh"].shape[1]
    EPI = 128                                   # lane-dense epilogue width
    Cp = _round_up(max(num_classes, 1), 128)    # lane-dense output width
    Wb = max(_round_up(4 * H, 128), EPI, Cp)    # packed-bias row width

    bf = lambda x: x.astype(jnp.bfloat16)

    lsc, lsh = _bn_scale_shift(p["lex_bn_gamma"], p["lex_bn_beta"],
                               p["lex_bn_mean"], p["lex_bn_var"])
    asc, ash = _bn_scale_shift(p["aud_bn_gamma"], p["aud_bn_beta"],
                               p["aud_bn_mean"], p["aud_bn_var"])

    # LSTM gate weights prepacked as (D, 4H) / (H, 4H): one matmul per step.
    prep = {
        "emb": bf(p["emb"]),
        "lex_wih4": bf(p["lex_w_ih"].T),
        "lex_whh4": bf(p["lex_w_hh"].T),
        "aud_wih4": bf(p["aud_w_ih"].T),
        "aud_whh4": bf(p["aud_w_hh"].T),
    }

    # lex fc1 with BN folded in, output lanes padded to EPI (pad cols are 0).
    lw1 = p["lex_fc1_w"].T * lsc[None, :]                       # (H, H)
    lb1 = p["lex_fc1_b"] * lsc + lsh                            # (H,)
    prep["lw1"] = bf(jnp.pad(lw1, ((0, 0), (0, EPI - H))))

    # audio fc1 (Flatten folded: rows are t*H+h) with BN folded in, padded.
    aw1 = p["aud_fc1_w"].T * asc[None, :]                       # (T*H, 2H)
    ab1 = p["aud_fc1_b"] * asc + ash                            # (2H,)
    prep["aw1"] = bf(jnp.pad(aw1, ((0, 0), (0, EPI - 2 * H))))

    # fc2 folded into the final linear (exact: no nonlinearity between them).
    fwl = p["fin_w"][:, :H].T                                   # (H, C)
    fwa = p["fin_w"][:, H:].T                                   # (H, C)
    LW = p["lex_fc2_w"].T @ fwl                                 # (H, C)
    AW = p["aud_fc2_w"].T @ fwa                                 # (2H, C)
    FB = p["lex_fc2_b"] @ fwl + p["aud_fc2_b"] @ fwa + p["fin_b"]  # (C,)
    prep["lw2f"] = bf(jnp.pad(LW, ((0, EPI - H), (0, Cp - num_classes))))
    prep["aw2f"] = bf(jnp.pad(AW, ((0, EPI - 2 * H), (0, Cp - num_classes))))

    # Pack all remaining small vectors into one (8, Wb) f32 VMEM array:
    # row 0: lex LSTM bias (b_ih+b_hh), row 1: audio LSTM bias,
    # row 2: folded lex fc1 bias, row 3: folded audio fc1 bias,
    # row 4: folded final bias. Padding lanes are zero (safe under ReLU).
    def row(v):
        v = v.astype(jnp.float32)
        return jnp.pad(v, (0, Wb - v.shape[0]))

    prep["bias"] = jnp.stack([
        row(p["lex_b_ih"] + p["lex_b_hh"]),
        row(p["aud_b_ih"] + p["aud_b_hh"]),
        row(lb1),
        row(ab1),
        row(FB),
        jnp.zeros((Wb,), jnp.float32),
        jnp.zeros((Wb,), jnp.float32),
        jnp.zeros((Wb,), jnp.float32),
    ], axis=0)
    return prep


# ----------------------------------------------------------------------------
# Fused forward: both LSTMs + decoders + final linear in one pallas_call.
# grid=(2,) "parallel": program 0 = lex branch, program 1 = audio branch.
# ----------------------------------------------------------------------------
def forward_pallas(prep, audio_input, lex_input, num_classes):
    B, T_aud, _ = audio_input.shape
    L_lex = lex_input.shape[1]
    H = prep["lex_whh4"].shape[0]
    G = 4 * H
    EPI = prep["lw1"].shape[1]
    Cp = prep["lw2f"].shape[1]
    Bp = max(8, _round_up(B, 8))

    # --- minimal per-call glue: gather, pad batch, time-major flatten --------
    emb = jnp.take(prep["emb"], lex_input, axis=0)          # (B, L, D) bf16

    def to_time_major(x):                                    # (B, T, D) -> (T*Bp, D)
        T, D = x.shape[1], x.shape[2]
        xp = jnp.pad(x, ((0, Bp - B), (0, 0), (0, 0)))
        return jnp.transpose(xp, (1, 0, 2)).reshape(T * Bp, D)

    lex_tm = to_time_major(emb)
    aud_tm = to_time_major(audio_input.astype(jnp.bfloat16))

    def kernel(lex_x_ref, aud_x_ref,
               lwih_ref, lwhh_ref, awih_ref, awhh_ref,
               lw1_ref, aw1_ref, lw2f_ref, aw2f_ref,
               b_ref, out_ref):
        branch = pl.program_id(0)

        def sig(x):                      # sigmoid via single tanh EUP pass
            return 0.5 * (jnp.tanh(0.5 * x) + 1.0)

        def run_lstm(x_ref, wih_ref, whh_ref, b_row, T, collect):
            # Hoisted input projection: one lane-dense bf16 matmul over T*Bp rows.
            xw = jnp.dot(x_ref[...], wih_ref[...],
                         preferred_element_type=jnp.float32) + b_row   # (T*Bp, 4H) f32
            whh = whh_ref[...]                                          # (H, 4H) bf16
            h = jnp.zeros((Bp, H), jnp.float32)
            c = jnp.zeros((Bp, H), jnp.float32)
            hs = []
            # Fully unrolled (T is small & static); one MXU matmul per step.
            for t in range(T):
                g = xw[t * Bp:(t + 1) * Bp, :] + jnp.dot(
                    h.astype(jnp.bfloat16), whh,
                    preferred_element_type=jnp.float32)                 # (Bp, 4H)
                i_g = sig(g[:, 0 * H:1 * H])
                f_g = sig(g[:, 1 * H:2 * H])
                g_g = jnp.tanh(g[:, 2 * H:3 * H])
                o_g = sig(g[:, 3 * H:4 * H])
                c = f_g * c + i_g * g_g
                h = o_g * jnp.tanh(c)
                if collect:
                    hs.append(h.astype(jnp.bfloat16))
            return h, hs

        # --- program 0: lex branch (LSTM -> folded fc1+BN -> ReLU -> folded
        #     fc2@final) + final bias ---------------------------------------
        @pl.when(branch == 0)
        def _():
            h, _ = run_lstm(lex_x_ref, lwih_ref, lwhh_ref,
                            b_ref[0:1, :G], L_lex, collect=False)
            z = jnp.dot(h.astype(jnp.bfloat16), lw1_ref[...],
                        preferred_element_type=jnp.float32) + b_ref[2:3, :EPI]
            r = jnp.maximum(z, 0.0).astype(jnp.bfloat16)               # (Bp, EPI)
            out_ref[...] = (jnp.dot(r, lw2f_ref[...],
                                    preferred_element_type=jnp.float32)
                            + b_ref[4:5, :Cp])

        # --- program 1: audio branch (LSTM -> deferred Flatten+fc1 as one
        #     K=T*H matmul -> ReLU -> folded fc2@final) ----------------------
        @pl.when(branch == 1)
        def _():
            _, hs = run_lstm(aud_x_ref, awih_ref, awhh_ref,
                             b_ref[1:2, :G], T_aud, collect=True)
            flat = jnp.concatenate(hs, axis=1)                          # (Bp, T*H) bf16
            a = jnp.dot(flat, aw1_ref[...],
                        preferred_element_type=jnp.float32) + b_ref[3:4, :EPI]
            a = jnp.maximum(a, 0.0).astype(jnp.bfloat16)                # (Bp, EPI)
            out_ref[...] = jnp.dot(a, aw2f_ref[...],
                                   preferred_element_type=jnp.float32)

    args = (lex_tm, aud_tm,
            prep["lex_wih4"], prep["lex_whh4"],
            prep["aud_wih4"], prep["aud_whh4"],
            prep["lw1"], prep["aw1"], prep["lw2f"], prep["aw2f"],
            prep["bias"])

    def full_spec(arr):
        nd = arr.ndim
        return pl.BlockSpec(arr.shape, lambda i: (0,) * nd)

    out = pl.pallas_call(
        kernel,
        out_shape=jax.ShapeDtypeStruct((2, Bp, Cp), jnp.float32),
        grid=(2,),
        in_specs=[full_spec(a) for a in args],
        out_specs=pl.BlockSpec((None, Bp, Cp), lambda i: (i, 0, 0)),
        compiler_params=pltpu.CompilerParams(
            dimension_semantics=("parallel",)),
    )(*args)

    return (out[0] + out[1])[:B, :num_classes]


# ----------------------------------------------------------------------------
# Pure-JAX f32 reference for validation
# ----------------------------------------------------------------------------
def _lstm_ref(x, w_ih, w_hh, b_ih, b_hh):
    B = x.shape[0]
    H = w_hh.shape[1]

    def step(carry, x_t):
        h, c = carry
        gates = x_t @ w_ih.T + h @ w_hh.T + b_ih + b_hh
        i = jax.nn.sigmoid(gates[:, :H])
        f = jax.nn.sigmoid(gates[:, H:2 * H])
        g = jnp.tanh(gates[:, 2 * H:3 * H])
        o = jax.nn.sigmoid(gates[:, 3 * H:])
        c = f * c + i * g
        h = o * jnp.tanh(c)
        return (h, c), h

    init = (jnp.zeros((B, H), jnp.float32), jnp.zeros((B, H), jnp.float32))
    (h, _), ys = jax.lax.scan(step, init, jnp.transpose(x, (1, 0, 2)))
    return jnp.transpose(ys, (1, 0, 2)), h


def forward_ref(p, audio_input, lex_input):
    B = audio_input.shape[0]
    emb = jnp.take(p["emb"], lex_input, axis=0)
    _, lex_h = _lstm_ref(emb, p["lex_w_ih"], p["lex_w_hh"],
                         p["lex_b_ih"], p["lex_b_hh"])
    z = lex_h @ p["lex_fc1_w"].T + p["lex_fc1_b"]
    z = (z - p["lex_bn_mean"]) / jnp.sqrt(p["lex_bn_var"] + BN_EPS) \
        * p["lex_bn_gamma"] + p["lex_bn_beta"]
    z = jnp.maximum(z, 0.0)
    lex_act = z @ p["lex_fc2_w"].T + p["lex_fc2_b"]

    aud_seq, _ = _lstm_ref(audio_input, p["aud_w_ih"], p["aud_w_hh"],
                           p["aud_b_ih"], p["aud_b_hh"])
    a = aud_seq.reshape(B, -1) @ p["aud_fc1_w"].T + p["aud_fc1_b"]
    a = (a - p["aud_bn_mean"]) / jnp.sqrt(p["aud_bn_var"] + BN_EPS) \
        * p["aud_bn_gamma"] + p["aud_bn_beta"]
    a = jnp.maximum(a, 0.0)
    aud_act = a @ p["aud_fc2_w"].T + p["aud_fc2_b"]

    acts = jnp.concatenate([lex_act, aud_act], axis=1)
    return acts @ p["fin_w"].T + p["fin_b"]


# ----------------------------------------------------------------------------
# Deterministic parameter init (shapes per the module's __init__)
# ----------------------------------------------------------------------------
def init_params(key, vocab_size, hidden, audio_dim, max_length, num_classes):
    glove_dim = hidden          # module ties hidden_size to embeddings.size(1)
    flat_dim = max_length * hidden
    ks = list(jax.random.split(key, 24))

    def uniform(k, shape, fan_in):
        bound = 1.0 / float(np.sqrt(fan_in))
        return jax.random.uniform(k, shape, jnp.float32, -bound, bound)

    p = {}
    p["emb"] = jax.random.normal(ks[0], (vocab_size, glove_dim), jnp.float32) * 0.1
    p["lex_w_ih"] = uniform(ks[1], (4 * hidden, glove_dim), hidden)
    p["lex_w_hh"] = uniform(ks[2], (4 * hidden, hidden), hidden)
    p["lex_b_ih"] = uniform(ks[3], (4 * hidden,), hidden)
    p["lex_b_hh"] = uniform(ks[4], (4 * hidden,), hidden)
    p["aud_w_ih"] = uniform(ks[5], (4 * hidden, audio_dim), hidden)
    p["aud_w_hh"] = uniform(ks[6], (4 * hidden, hidden), hidden)
    p["aud_b_ih"] = uniform(ks[7], (4 * hidden,), hidden)
    p["aud_b_hh"] = uniform(ks[8], (4 * hidden,), hidden)
    p["lex_fc1_w"] = uniform(ks[9], (hidden, hidden), hidden)
    p["lex_fc1_b"] = uniform(ks[10], (hidden,), hidden)
    p["lex_fc2_w"] = uniform(ks[11], (hidden, hidden), hidden)
    p["lex_fc2_b"] = uniform(ks[12], (hidden,), hidden)
    p["aud_fc1_w"] = uniform(ks[13], (2 * hidden, flat_dim), flat_dim)
    p["aud_fc1_b"] = uniform(ks[14], (2 * hidden,), flat_dim)
    p["aud_fc2_w"] = uniform(ks[15], (hidden, 2 * hidden), 2 * hidden)
    p["aud_fc2_b"] = uniform(ks[16], (hidden,), 2 * hidden)
    p["fin_w"] = uniform(ks[17], (num_classes, 2 * hidden), 2 * hidden)
    p["fin_b"] = uniform(ks[18], (num_classes,), 2 * hidden)
    p["lex_bn_gamma"] = jnp.ones((hidden,), jnp.float32)
    p["lex_bn_beta"] = jnp.zeros((hidden,), jnp.float32)
    p["lex_bn_mean"] = jnp.zeros((hidden,), jnp.float32)
    p["lex_bn_var"] = jnp.ones((hidden,), jnp.float32)
    p["aud_bn_gamma"] = jnp.ones((2 * hidden,), jnp.float32)
    p["aud_bn_beta"] = jnp.zeros((2 * hidden,), jnp.float32)
    p["aud_bn_mean"] = jnp.zeros((2 * hidden,), jnp.float32)
    p["aud_bn_var"] = jnp.ones((2 * hidden,), jnp.float32)
    return p


if __name__ == "__main__":
    B = 4                 # batch
    MAX_LENGTH = 8        # config.max_length (audio sequence length)
    L_LEX = 10            # lexical sequence length
    HIDDEN = 32           # config.hidden_size == glove_dim
    AUDIO_DIM = 16
    VOCAB = 20
    NUM_CLASSES = 4

    key = jax.random.PRNGKey(0)
    pkey, dkey = jax.random.split(key)
    params = init_params(pkey, VOCAB, HIDDEN, AUDIO_DIM, MAX_LENGTH, NUM_CLASSES)

    # One-time prepacking (cached across calls; not in the jitted hot path).
    prep = prepare_params(params, NUM_CLASSES)

    k_a, k_l = jax.random.split(dkey)
    audio_input = jax.random.normal(k_a, (B, MAX_LENGTH, AUDIO_DIM), jnp.float32)
    lex_input = jax.random.randint(k_l, (B, L_LEX), 0, VOCAB)

    forward_jit = jax.jit(forward_pallas, static_argnums=(3,))
    out = forward_jit(prep, audio_input, lex_input, NUM_CLASSES)
    out = jax.block_until_ready(out)

    ref = forward_ref(params, audio_input, lex_input)
    assert out.shape == (B, NUM_CLASSES)
    # bf16 matmul operands (f32 accumulation/state) -> slightly looser tolerance.
    np.testing.assert_allclose(np.asarray(out), np.asarray(ref),
                               rtol=3e-2, atol=3e-2)
    print("KERNEL_OK")
</pallas_src>

<mosaic_0001>
module attributes {stable_mosaic.version = 11 : i64} {
  func.func @kernel(%arg0: i32, %arg1: memref<80x32xbf16, #tpu.memory_space<vmem>>, %arg2: memref<64x16xbf16, #tpu.memory_space<vmem>>, %arg3: memref<32x128xbf16, #tpu.memory_space<vmem>>, %arg4: memref<32x128xbf16, #tpu.memory_space<vmem>>, %arg5: memref<16x128xbf16, #tpu.memory_space<vmem>>, %arg6: memref<32x128xbf16, #tpu.memory_space<vmem>>, %arg7: memref<32x128xbf16, #tpu.memory_space<vmem>>, %arg8: memref<256x128xbf16, #tpu.memory_space<vmem>>, %arg9: memref<128x128xbf16, #tpu.memory_space<vmem>>, %arg10: memref<128x128xbf16, #tpu.memory_space<vmem>>, %arg11: memref<8x128xf32, #tpu.memory_space<vmem>>, %arg12: memref<1x8x128xf32, #tpu.memory_space<vmem>>) attributes {dimension_semantics = [#tpu.dimension_semantics<parallel>], iteration_bounds = array<i64: 2>, scalar_prefetch = 0 : i64, scratch_operands = 0 : i64, tpu.core_type = #tpu.core_type<tc>, window_params = [{pipeline_mode = #tpu.pipeline_mode<synchronous>, transform_indices = @transform_0, window_bounds = array<i64: 80, 32>}, {pipeline_mode = #tpu.pipeline_mode<synchronous>, transform_indices = @transform_1, window_bounds = array<i64: 64, 16>}, {pipeline_mode = #tpu.pipeline_mode<synchronous>, transform_indices = @transform_2, window_bounds = array<i64: 32, 128>}, {pipeline_mode = #tpu.pipeline_mode<synchronous>, transform_indices = @transform_3, window_bounds = array<i64: 32, 128>}, {pipeline_mode = #tpu.pipeline_mode<synchronous>, transform_indices = @transform_4, window_bounds = array<i64: 16, 128>}, {pipeline_mode = #tpu.pipeline_mode<synchronous>, transform_indices = @transform_5, window_bounds = array<i64: 32, 128>}, {pipeline_mode = #tpu.pipeline_mode<synchronous>, transform_indices = @transform_6, window_bounds = array<i64: 32, 128>}, {pipeline_mode = #tpu.pipeline_mode<synchronous>, transform_indices = @transform_7, window_bounds = array<i64: 256, 128>}, {pipeline_mode = #tpu.pipeline_mode<synchronous>, transform_indices = @transform_8, window_bounds = array<i64: 128, 128>}, {pipeline_mode = #tpu.pipeline_mode<synchronous>, transform_indices = @transform_9, window_bounds = array<i64: 128, 128>}, {pipeline_mode = #tpu.pipeline_mode<synchronous>, transform_indices = @transform_10, window_bounds = array<i64: 8, 128>}, {transform_indices = @transform_11, window_bounds = array<i64: 1, 8, 128>}]} {
    %c0_i32 = arith.constant 0 : i32
    %0 = arith.cmpi eq, %arg0, %c0_i32 : i32
    %1 = arith.extui %0 : i1 to i32
    %c0_i32_0 = arith.constant 0 : i32
    %2 = arith.cmpi ne, %1, %c0_i32_0 : i32
    scf.if %2 {
      %c0 = arith.constant 0 : index
      %c0_2 = arith.constant 0 : index
      %6 = vector.load %arg11[%c0, %c0_2] : memref<8x128xf32, #tpu.memory_space<vmem>>, vector<1x128xf32>
      %c0_3 = arith.constant 0 : index
      %c0_4 = arith.constant 0 : index
      %7 = vector.load %arg1[%c0_3, %c0_4] : memref<80x32xbf16, #tpu.memory_space<vmem>>, vector<80x32xbf16>
      %c0_5 = arith.constant 0 : index
      %c0_6 = arith.constant 0 : index
      %8 = vector.load %arg3[%c0_5, %c0_6] : memref<32x128xbf16, #tpu.memory_space<vmem>>, vector<32x128xbf16>
      %cst = arith.constant dense<0.000000e+00> : vector<80x128xf32>
      %9 = tpu.matmul %7, %8, %cst {dimension_numbers = #tpu.dot_dimension_numbers<[1], [0], [0], [1], [0, 0, 1, 1], [], []>} : vector<80x32xbf16>, vector<32x128xbf16>, vector<80x128xf32> -> vector<80x128xf32>
      %10 = vector.broadcast %6 : vector<1x128xf32> to vector<80x128xf32>
      %11 = arith.addf %9, %10 : vector<80x128xf32>
      %c0_7 = arith.constant 0 : index
      %c0_8 = arith.constant 0 : index
      %12 = vector.load %arg4[%c0_7, %c0_8] : memref<32x128xbf16, #tpu.memory_space<vmem>>, vector<32x128xbf16>
      %cst_9 = arith.constant 0.000000e+00 : f32
      %13 = vector.broadcast %cst_9 : f32 to vector<8x32xf32>
      %cst_10 = arith.constant 0.000000e+00 : f32
      %14 = vector.broadcast %cst_10 : f32 to vector<8x32xf32>
      %15 = vector.extract_strided_slice %11 {offsets = [0, 0], sizes = [8, 128], strides = [1, 1]} : vector<80x128xf32> to vector<8x128xf32>
      %16 = arith.truncf %13 : vector<8x32xf32> to vector<8x32xbf16>
      %cst_11 = arith.constant dense<0.000000e+00> : vector<8x128xf32>
      %17 = tpu.matmul %16, %12, %cst_11 {dimension_numbers = #tpu.dot_dimension_numbers<[1], [0], [0], [1], [0, 0, 1, 1], [], []>} : vector<8x32xbf16>, vector<32x128xbf16>, vector<8x128xf32> -> vector<8x128xf32>
      %18 = arith.addf %15, %17 : vector<8x128xf32>
      %19 = vector.extract_strided_slice %18 {offsets = [0, 0], sizes = [8, 32], strides = [1, 1]} : vector<8x128xf32> to vector<8x32xf32>
      %cst_12 = arith.constant 5.000000e-01 : f32
      %20 = vector.broadcast %cst_12 : f32 to vector<8x32xf32>
      %21 = arith.mulf %20, %19 : vector<8x32xf32>
      %22 = math.tanh %21 : vector<8x32xf32>
      %cst_13 = arith.constant 1.000000e+00 : f32
      %23 = vector.broadcast %cst_13 : f32 to vector<8x32xf32>
      %24 = arith.addf %22, %23 : vector<8x32xf32>
      %cst_14 = arith.constant 5.000000e-01 : f32
      %25 = vector.broadcast %cst_14 : f32 to vector<8x32xf32>
      %26 = arith.mulf %25, %24 : vector<8x32xf32>
      %27 = vector.extract_strided_slice %18 {offsets = [0, 32], sizes = [8, 32], strides = [1, 1]} : vector<8x128xf32> to vector<8x32xf32>
      %cst_15 = arith.constant 5.000000e-01 : f32
      %28 = vector.broadcast %cst_15 : f32 to vector<8x32xf32>
      %29 = arith.mulf %28, %27 : vector<8x32xf32>
      %30 = math.tanh %29 : vector<8x32xf32>
      %cst_16 = arith.constant 1.000000e+00 : f32
      %31 = vector.broadcast %cst_16 : f32 to vector<8x32xf32>
      %32 = arith.addf %30, %31 : vector<8x32xf32>
      %cst_17 = arith.constant 5.000000e-01 : f32
      %33 = vector.broadcast %cst_17 : f32 to vector<8x32xf32>
      %34 = arith.mulf %33, %32 : vector<8x32xf32>
      %35 = vector.extract_strided_slice %18 {offsets = [0, 64], sizes = [8, 32], strides = [1, 1]} : vector<8x128xf32> to vector<8x32xf32>
      %36 = math.tanh %35 : vector<8x32xf32>
      %37 = vector.extract_strided_slice %18 {offsets = [0, 96], sizes = [8, 32], strides = [1, 1]} : vector<8x128xf32> to vector<8x32xf32>
      %cst_18 = arith.constant 5.000000e-01 : f32
      %38 = vector.broadcast %cst_18 : f32 to vector<8x32xf32>
      %39 = arith.mulf %38, %37 : vector<8x32xf32>
      %40 = math.tanh %39 : vector<8x32xf32>
      %cst_19 = arith.constant 1.000000e+00 : f32
      %41 = vector.broadcast %cst_19 : f32 to vector<8x32xf32>
      %42 = arith.addf %40, %41 : vector<8x32xf32>
      %cst_20 = arith.constant 5.000000e-01 : f32
      %43 = vector.broadcast %cst_20 : f32 to vector<8x32xf32>
      %44 = arith.mulf %43, %42 : vector<8x32xf32>
      %45 = arith.mulf %34, %14 : vector<8x32xf32>
      %46 = arith.mulf %26, %36 : vector<8x32xf32>
      %47 = arith.addf %45, %46 : vector<8x32xf32>
      %48 = math.tanh %47 : vector<8x32xf32>
      %49 = arith.mulf %44, %48 : vector<8x32xf32>
      %50 = vector.extract_strided_slice %11 {offsets = [8, 0], sizes = [8, 128], strides = [1, 1]} : vector<80x128xf32> to vector<8x128xf32>
      %51 = arith.truncf %49 : vector<8x32xf32> to vector<8x32xbf16>
      %cst_21 = arith.constant dense<0.000000e+00> : vector<8x128xf32>
      %52 = tpu.matmul %51, %12, %cst_21 {dimension_numbers = #tpu.dot_dimension_numbers<[1], [0], [0], [1], [0, 0, 1, 1], [], []>} : vector<8x32xbf16>, vector<32x128xbf16>, vector<8x128xf32> -> vector<8x128xf32>
      %53 = arith.addf %50, %52 : vector<8x128xf32>
      %54 = vector.extract_strided_slice %53 {offsets = [0, 0], sizes = [8, 32], strides = [1, 1]} : vector<8x128xf32> to vector<8x32xf32>
      %cst_22 = arith.constant 5.000000e-01 : f32
      %55 = vector.broadcast %cst_22 : f32 to vector<8x32xf32>
      %56 = arith.mulf %55, %54 : vector<8x32xf32>
      %57 = math.tanh %56 : vector<8x32xf32>
      %cst_23 = arith.constant 1.000000e+00 : f32
      %58 = vector.broadcast %cst_23 : f32 to vector<8x32xf32>
      %59 = arith.addf %57, %58 : vector<8x32xf32>
      %cst_24 = arith.constant 5.000000e-01 : f32
      %60 = vector.broadcast %cst_24 : f32 to vector<8x32xf32>
      %61 = arith.mulf %60, %59 : vector<8x32xf32>
      %62 = vector.extract_strided_slice %53 {offsets = [0, 32], sizes = [8, 32], strides = [1, 1]} : vector<8x128xf32> to vector<8x32xf32>
      %cst_25 = arith.constant 5.000000e-01 : f32
      %63 = vector.broadcast %cst_25 : f32 to vector<8x32xf32>
      %64 = arith.mulf %63, %62 : vector<8x32xf32>
      %65 = math.tanh %64 : vector<8x32xf32>
      %cst_26 = arith.constant 1.000000e+00 : f32
      %66 = vector.broadcast %cst_26 : f32 to vector<8x32xf32>
      %67 = arith.addf %65, %66 : vector<8x32xf32>
      %cst_27 = arith.constant 5.000000e-01 : f32
      %68 = vector.broadcast %cst_27 : f32 to vector<8x32xf32>
      %69 = arith.mulf %68, %67 : vector<8x32xf32>
      %70 = vector.extract_strided_slice %53 {offsets = [0, 64], sizes = [8, 32], strides = [1, 1]} : vector<8x128xf32> to vector<8x32xf32>
      %71 = math.tanh %70 : vector<8x32xf32>
      %72 = vector.extract_strided_slice %53 {offsets = [0, 96], sizes = [8, 32], strides = [1, 1]} : vector<8x128xf32> to vector<8x32xf32>
      %cst_28 = arith.constant 5.000000e-01 : f32
      %73 = vector.broadcast %cst_28 : f32 to vector<8x32xf32>
      %74 = arith.mulf %73, %72 : vector<8x32xf32>
      %75 = math.tanh %74 : vector<8x32xf32>
      %cst_29 = arith.constant 1.000000e+00 : f32
      %76 = vector.broadcast %cst_29 : f32 to vector<8x32xf32>
      %77 = arith.addf %75, %76 : vector<8x32xf32>
      %cst_30 = arith.constant 5.000000e-01 : f32
      %78 = vector.broadcast %cst_30 : f32 to vector<8x32xf32>
      %79 = arith.mulf %78, %77 : vector<8x32xf32>
      %80 = arith.mulf %69, %47 : vector<8x32xf32>
      %81 = arith.mulf %61, %71 : vector<8x32xf32>
      %82 = arith.addf %80, %81 : vector<8x32xf32>
      %83 = math.tanh %82 : vector<8x32xf32>
      %84 = arith.mulf %79, %83 : vector<8x32xf32>
      %85 = vector.extract_strided_slice %11 {offsets = [16, 0], sizes = [8, 128], strides = [1, 1]} : vector<80x128xf32> to vector<8x128xf32>
      %86 = arith.truncf %84 : vector<8x32xf32> to vector<8x32xbf16>
      %cst_31 = arith.constant dense<0.000000e+00> : vector<8x128xf32>
      %87 = tpu.matmul %86, %12, %cst_31 {dimension_numbers = #tpu.dot_dimension_numbers<[1], [0], [0], [1], [0, 0, 1, 1], [], []>} : vector<8x32xbf16>, vector<32x128xbf16>, vector<8x128xf32> -> vector<8x128xf32>
      %88 = arith.addf %85, %87 : vector<8x128xf32>
      %89 = vector.extract_strided_slice %88 {offsets = [0, 0], sizes = [8, 32], strides = [1, 1]} : vector<8x128xf32> to vector<8x32xf32>
      %cst_32 = arith.constant 5.000000e-01 : f32
      %90 = vector.broadcast %cst_32 : f32 to vector<8x32xf32>
      %91 = arith.mulf %90, %89 : vector<8x32xf32>
      %92 = math.tanh %91 : vector<8x32xf32>
      %cst_33 = arith.constant 1.000000e+00 : f32
      %93 = vector.broadcast %cst_33 : f32 to vector<8x32xf32>
      %94 = arith.addf %92, %93 : vector<8x32xf32>
      %cst_34 = arith.constant 5.000000e-01 : f32
      %95 = vector.broadcast %cst_34 : f32 to vector<8x32xf32>
      %96 = arith.mulf %95, %94 : vector<8x32xf32>
      %97 = vector.extract_strided_slice %88 {offsets = [0, 32], sizes = [8, 32], strides = [1, 1]} : vector<8x128xf32> to vector<8x32xf32>
      %cst_35 = arith.constant 5.000000e-01 : f32
      %98 = vector.broadcast %cst_35 : f32 to vector<8x32xf32>
      %99 = arith.mulf %98, %97 : vector<8x32xf32>
      %100 = math.tanh %99 : vector<8x32xf32>
      %cst_36 = arith.constant 1.000000e+00 : f32
      %101 = vector.broadcast %cst_36 : f32 to vector<8x32xf32>
      %102 = arith.addf %100, %101 : vector<8x32xf32>
      %cst_37 = arith.constant 5.000000e-01 : f32
      %103 = vector.broadcast %cst_37 : f32 to vector<8x32xf32>
      %104 = arith.mulf %103, %102 : vector<8x32xf32>
      %105 = vector.extract_strided_slice %88 {offsets = [0, 64], sizes = [8, 32], strides = [1, 1]} : vector<8x128xf32> to vector<8x32xf32>
      %106 = math.tanh %105 : vector<8x32xf32>
      %107 = vector.extract_strided_slice %88 {offsets = [0, 96], sizes = [8, 32], strides = [1, 1]} : vector<8x128xf32> to vector<8x32xf32>
      %cst_38 = arith.constant 5.000000e-01 : f32
      %108 = vector.broadcast %cst_38 : f32 to vector<8x32xf32>
      %109 = arith.mulf %108, %107 : vector<8x32xf32>
      %110 = math.tanh %109 : vector<8x32xf32>
      %cst_39 = arith.constant 1.000000e+00 : f32
      %111 = vector.broadcast %cst_39 : f32 to vector<8x32xf32>
      %112 = arith.addf %110, %111 : vector<8x32xf32>
      %cst_40 = arith.constant 5.000000e-01 : f32
      %113 = vector.broadcast %cst_40 : f32 to vector<8x32xf32>
      %114 = arith.mulf %113, %112 : vector<8x32xf32>
      %115 = arith.mulf %104, %82 : vector<8x32xf32>
      %116 = arith.mulf %96, %106 : vector<8x32xf32>
      %117 = arith.addf %115, %116 : vector<8x32xf32>
      %118 = math.tanh %117 : vector<8x32xf32>
      %119 = arith.mulf %114, %118 : vector<8x32xf32>
      %120 = vector.extract_strided_slice %11 {offsets = [24, 0], sizes = [8, 128], strides = [1, 1]} : vector<80x128xf32> to vector<8x128xf32>
      %121 = arith.truncf %119 : vector<8x32xf32> to vector<8x32xbf16>
      %cst_41 = arith.constant dense<0.000000e+00> : vector<8x128xf32>
      %122 = tpu.matmul %121, %12, %cst_41 {dimension_numbers = #tpu.dot_dimension_numbers<[1], [0], [0], [1], [0, 0, 1, 1], [], []>} : vector<8x32xbf16>, vector<32x128xbf16>, vector<8x128xf32> -> vector<8x128xf32>
      %123 = arith.addf %120, %122 : vector<8x128xf32>
      %124 = vector.extract_strided_slice %123 {offsets = [0, 0], sizes = [8, 32], strides = [1, 1]} : vector<8x128xf32> to vector<8x32xf32>
      %cst_42 = arith.constant 5.000000e-01 : f32
      %125 = vector.broadcast %cst_42 : f32 to vector<8x32xf32>
      %126 = arith.mulf %125, %124 : vector<8x32xf32>
      %127 = math.tanh %126 : vector<8x32xf32>
      %cst_43 = arith.constant 1.000000e+00 : f32
      %128 = vector.broadcast %cst_43 : f32 to vector<8x32xf32>
      %129 = arith.addf %127, %128 : vector<8x32xf32>
      %cst_44 = arith.constant 5.000000e-01 : f32
      %130 = vector.broadcast %cst_44 : f32 to vector<8x32xf32>
      %131 = arith.mulf %130, %129 : vector<8x32xf32>
      %132 = vector.extract_strided_slice %123 {offsets = [0, 32], sizes = [8, 32], strides = [1, 1]} : vector<8x128xf32> to vector<8x32xf32>
      %cst_45 = arith.constant 5.000000e-01 : f32
      %133 = vector.broadcast %cst_45 : f32 to vector<8x32xf32>
      %134 = arith.mulf %133, %132 : vector<8x32xf32>
      %135 = math.tanh %134 : vector<8x32xf32>
      %cst_46 = arith.constant 1.000000e+00 : f32
      %136 = vector.broadcast %cst_46 : f32 to vector<8x32xf32>
      %137 = arith.addf %135, %136 : vector<8x32xf32>
      %cst_47 = arith.constant 5.000000e-01 : f32
      %138 = vector.broadcast %cst_47 : f32 to vector<8x32xf32>
      %139 = arith.mulf %138, %137 : vector<8x32xf32>
      %140 = vector.extract_strided_slice %123 {offsets = [0, 64], sizes = [8, 32], strides = [1, 1]} : vector<8x128xf32> to vector<8x32xf32>
      %141 = math.tanh %140 : vector<8x32xf32>
      %142 = vector.extract_strided_slice %123 {offsets = [0, 96], sizes = [8, 32], strides = [1, 1]} : vector<8x128xf32> to vector<8x32xf32>
      %cst_48 = arith.constant 5.000000e-01 : f32
      %143 = vector.broadcast %cst_48 : f32 to vector<8x32xf32>
      %144 = arith.mulf %143, %142 : vector<8x32xf32>
      %145 = math.tanh %144 : vector<8x32xf32>
      %cst_49 = arith.constant 1.000000e+00 : f32
      %146 = vector.broadcast %cst_49 : f32 to vector<8x32xf32>
      %147 = arith.addf %145, %146 : vector<8x32xf32>
      %cst_50 = arith.constant 5.000000e-01 : f32
      %148 = vector.broadcast %cst_50 : f32 to vector<8x32xf32>
      %149 = arith.mulf %148, %147 : vector<8x32xf32>
      %150 = arith.mulf %139, %117 : vector<8x32xf32>
      %151 = arith.mulf %131, %141 : vector<8x32xf32>
      %152 = arith.addf %150, %151 : vector<8x32xf32>
      %153 = math.tanh %152 : vector<8x32xf32>
      %154 = arith.mulf %149, %153 : vector<8x32xf32>
      %155 = vector.extract_strided_slice %11 {offsets = [32, 0], sizes = [8, 128], strides = [1, 1]} : vector<80x128xf32> to vector<8x128xf32>
      %156 = arith.truncf %154 : vector<8x32xf32> to vector<8x32xbf16>
      %cst_51 = arith.constant dense<0.000000e+00> : vector<8x128xf32>
      %157 = tpu.matmul %156, %12, %cst_51 {dimension_numbers = #tpu.dot_dimension_numbers<[1], [0], [0], [1], [0, 0, 1, 1], [], []>} : vector<8x32xbf16>, vector<32x128xbf16>, vector<8x128xf32> -> vector<8x128xf32>
      %158 = arith.addf %155, %157 : vector<8x128xf32>
      %159 = vector.extract_strided_slice %158 {offsets = [0, 0], sizes = [8, 32], strides = [1, 1]} : vector<8x128xf32> to vector<8x32xf32>
      %cst_52 = arith.constant 5.000000e-01 : f32
      %160 = vector.broadcast %cst_52 : f32 to vector<8x32xf32>
      %161 = arith.mulf %160, %159 : vector<8x32xf32>
      %162 = math.tanh %161 : vector<8x32xf32>
      %cst_53 = arith.constant 1.000000e+00 : f32
      %163 = vector.broadcast %cst_53 : f32 to vector<8x32xf32>
      %164 = arith.addf %162, %163 : vector<8x32xf32>
      %cst_54 = arith.constant 5.000000e-01 : f32
      %165 = vector.broadcast %cst_54 : f32 to vector<8x32xf32>
      %166 = arith.mulf %165, %164 : vector<8x32xf32>
      %167 = vector.extract_strided_slice %158 {offsets = [0, 32], sizes = [8, 32], strides = [1, 1]} : vector<8x128xf32> to vector<8x32xf32>
      %cst_55 = arith.constant 5.000000e-01 : f32
      %168 = vector.broadcast %cst_55 : f32 to vector<8x32xf32>
      %169 = arith.mulf %168, %167 : vector<8x32xf32>
      %170 = math.tanh %169 : vector<8x32xf32>
      %cst_56 = arith.constant 1.000000e+00 : f32
      %171 = vector.broadcast %cst_56 : f32 to vector<8x32xf32>
      %172 = arith.addf %170, %171 : vector<8x32xf32>
      %cst_57 = arith.constant 5.000000e-01 : f32
      %173 = vector.broadcast %cst_57 : f32 to vector<8x32xf32>
      %174 = arith.mulf %173, %172 : vector<8x32xf32>
      %175 = vector.extract_strided_slice %158 {offsets = [0, 64], sizes = [8, 32], strides = [1, 1]} : vector<8x128xf32> to vector<8x32xf32>
      %176 = math.tanh %175 : vector<8x32xf32>
      %177 = vector.extract_strided_slice %158 {offsets = [0, 96], sizes = [8, 32], strides = [1, 1]} : vector<8x128xf32> to vector<8x32xf32>
      %cst_58 = arith.constant 5.000000e-01 : f32
      %178 = vector.broadcast %cst_58 : f32 to vector<8x32xf32>
      %179 = arith.mulf %178, %177 : vector<8x32xf32>
      %180 = math.tanh %179 : vector<8x32xf32>
      %cst_59 = arith.constant 1.000000e+00 : f32
      %181 = vector.broadcast %cst_59 : f32 to vector<8x32xf32>
      %182 = arith.addf %180, %181 : vector<8x32xf32>
      %cst_60 = arith.constant 5.000000e-01 : f32
      %183 = vector.broadcast %cst_60 : f32 to vector<8x32xf32>
      %184 = arith.mulf %183, %182 : vector<8x32xf32>
      %185 = arith.mulf %174, %152 : vector<8x32xf32>
      %186 = arith.mulf %166, %176 : vector<8x32xf32>
      %187 = arith.addf %185, %186 : vector<8x32xf32>
      %188 = math.tanh %187 : vector<8x32xf32>
      %189 = arith.mulf %184, %188 : vector<8x32xf32>
      %190 = vector.extract_strided_slice %11 {offsets = [40, 0], sizes = [8, 128], strides = [1, 1]} : vector<80x128xf32> to vector<8x128xf32>
      %191 = arith.truncf %189 : vector<8x32xf32> to vector<8x32xbf16>
      %cst_61 = arith.constant dense<0.000000e+00> : vector<8x128xf32>
      %192 = tpu.matmul %191, %12, %cst_61 {dimension_numbers = #tpu.dot_dimension_numbers<[1], [0], [0], [1], [0, 0, 1, 1], [], []>} : vector<8x32xbf16>, vector<32x128xbf16>, vector<8x128xf32> -> vector<8x128xf32>
      %193 = arith.addf %190, %192 : vector<8x128xf32>
      %194 = vector.extract_strided_slice %193 {offsets = [0, 0], sizes = [8, 32], strides = [1, 1]} : vector<8x128xf32> to vector<8x32xf32>
      %cst_62 = arith.constant 5.000000e-01 : f32
      %195 = vector.broadcast %cst_62 : f32 to vector<8x32xf32>
      %196 = arith.mulf %195, %194 : vector<8x32xf32>
      %197 = math.tanh %196 : vector<8x32xf32>
      %cst_63 = arith.constant 1.000000e+00 : f32
      %198 = vector.broadcast %cst_63 : f32 to vector<8x32xf32>
      %199 = arith.addf %197, %198 : vector<8x32xf32>
      %cst_64 = arith.constant 5.000000e-01 : f32
      %200 = vector.broadcast %cst_64 : f32 to vector<8x32xf32>
      %201 = arith.mulf %200, %199 : vector<8x32xf32>
      %202 = vector.extract_strided_slice %193 {offsets = [0, 32], sizes = [8, 32], strides = [1, 1]} : vector<8x128xf32> to vector<8x32xf32>
      %cst_65 = arith.constant 5.000000e-01 : f32
      %203 = vector.broadcast %cst_65 : f32 to vector<8x32xf32>
      %204 = arith.mulf %203, %202 : vector<8x32xf32>
      %205 = math.tanh %204 : vector<8x32xf32>
      %cst_66 = arith.constant 1.000000e+00 : f32
      %206 = vector.broadcast %cst_66 : f32 to vector<8x32xf32>
      %207 = arith.addf %205, %206 : vector<8x32xf32>
      %cst_67 = arith.constant 5.000000e-01 : f32
      %208 = vector.broadcast %cst_67 : f32 to vector<8x32xf32>
      %209 = arith.mulf %208, %207 : vector<8x32xf32>
      %210 = vector.extract_strided_slice %193 {offsets = [0, 64], sizes = [8, 32], strides = [1, 1]} : vector<8x128xf32> to vector<8x32xf32>
      %211 = math.tanh %210 : vector<8x32xf32>
      %212 = vector.extract_strided_slice %193 {offsets = [0, 96], sizes = [8, 32], strides = [1, 1]} : vector<8x128xf32> to vector<8x32xf32>
      %cst_68 = arith.constant 5.000000e-01 : f32
      %213 = vector.broadcast %cst_68 : f32 to vector<8x32xf32>
      %214 = arith.mulf %213, %212 : vector<8x32xf32>
      %215 = math.tanh %214 : vector<8x32xf32>
      %cst_69 = arith.constant 1.000000e+00 : f32
      %216 = vector.broadcast %cst_69 : f32 to vector<8x32xf32>
      %217 = arith.addf %215, %216 : vector<8x32xf32>
      %cst_70 = arith.constant 5.000000e-01 : f32
      %218 = vector.broadcast %cst_70 : f32 to vector<8x32xf32>
      %219 = arith.mulf %218, %217 : vector<8x32xf32>
      %220 = arith.mulf %209, %187 : vector<8x32xf32>
      %221 = arith.mulf %201, %211 : vector<8x32xf32>
      %222 = arith.addf %220, %221 : vector<8x32xf32>
      %223 = math.tanh %222 : vector<8x32xf32>
      %224 = arith.mulf %219, %223 : vector<8x32xf32>
      %225 = vector.extract_strided_slice %11 {offsets = [48, 0], sizes = [8, 128], strides = [1, 1]} : vector<80x128xf32> to vector<8x128xf32>
      %226 = arith.truncf %224 : vector<8x32xf32> to vector<8x32xbf16>
      %cst_71 = arith.constant dense<0.000000e+00> : vector<8x128xf32>
      %227 = tpu.matmul %226, %12, %cst_71 {dimension_numbers = #tpu.dot_dimension_numbers<[1], [0], [0], [1], [0, 0, 1, 1], [], []>} : vector<8x32xbf16>, vector<32x128xbf16>, vector<8x128xf32> -> vector<8x128xf32>
      %228 = arith.addf %225, %227 : vector<8x128xf32>
      %229 = vector.extract_strided_slice %228 {offsets = [0, 0], sizes = [8, 32], strides = [1, 1]} : vector<8x128xf32> to vector<8x32xf32>
      %cst_72 = arith.constant 5.000000e-01 : f32
      %230 = vector.broadcast %cst_72 : f32 to vector<8x32xf32>
      %231 = arith.mulf %230, %229 : vector<8x32xf32>
      %232 = math.tanh %231 : vector<8x32xf32>
      %cst_73 = arith.constant 1.000000e+00 : f32
      %233 = vector.broadcast %cst_73 : f32 to vector<8x32xf32>
      %234 = arith.addf %232, %233 : vector<8x32xf32>
      %cst_74 = arith.constant 5.000000e-01 : f32
      %235 = vector.broadcast %cst_74 : f32 to vector<8x32xf32>
      %236 = arith.mulf %235, %234 : vector<8x32xf32>
      %237 = vector.extract_strided_slice %228 {offsets = [0, 32], sizes = [8, 32], strides = [1, 1]} : vector<8x128xf32> to vector<8x32xf32>
      %cst_75 = arith.constant 5.000000e-01 : f32
      %238 = vector.broadcast %cst_75 : f32 to vector<8x32xf32>
      %239 = arith.mulf %238, %237 : vector<8x32xf32>
      %240 = math.tanh %239 : vector<8x32xf32>
      %cst_76 = arith.constant 1.000000e+00 : f32
      %241 = vector.broadcast %cst_76 : f32 to vector<8x32xf32>
      %242 = arith.addf %240, %241 : vector<8x32xf32>
      %cst_77 = arith.constant 5.000000e-01 : f32
      %243 = vector.broadcast %cst_77 : f32 to vector<8x32xf32>
      %244 = arith.mulf %243, %242 : vector<8x32xf32>
      %245 = vector.extract_strided_slice %228 {offsets = [0, 64], sizes = [8, 32], strides = [1, 1]} : vector<8x128xf32> to vector<8x32xf32>
      %246 = math.tanh %245 : vector<8x32xf32>
      %247 = vector.extract_strided_slice %228 {offsets = [0, 96], sizes = [8, 32], strides = [1, 1]} : vector<8x128xf32> to vector<8x32xf32>
      %cst_78 = arith.constant 5.000000e-01 : f32
      %248 = vector.broadcast %cst_78 : f32 to vector<8x32xf32>
      %249 = arith.mulf %248, %247 : vector<8x32xf32>
      %250 = math.tanh %249 : vector<8x32xf32>
      %cst_79 = arith.constant 1.000000e+00 : f32
      %251 = vector.broadcast %cst_79 : f32 to vector<8x32xf32>
      %252 = arith.addf %250, %251 : vector<8x32xf32>
      %cst_80 = arith.constant 5.000000e-01 : f32
      %253 = vector.broadcast %cst_80 : f32 to vector<8x32xf32>
      %254 = arith.mulf %253, %252 : vector<8x32xf32>
      %255 = arith.mulf %244, %222 : vector<8x32xf32>
      %256 = arith.mulf %236, %246 : vector<8x32xf32>
      %257 = arith.addf %255, %256 : vector<8x32xf32>
      %258 = math.tanh %257 : vector<8x32xf32>
      %259 = arith.mulf %254, %258 : vector<8x32xf32>
      %260 = vector.extract_strided_slice %11 {offsets = [56, 0], sizes = [8, 128], strides = [1, 1]} : vector<80x128xf32> to vector<8x128xf32>
      %261 = arith.truncf %259 : vector<8x32xf32> to vector<8x32xbf16>
      %cst_81 = arith.constant dense<0.000000e+00> : vector<8x128xf32>
      %262 = tpu.matmul %261, %12, %cst_81 {dimension_numbers = #tpu.dot_dimension_numbers<[1], [0], [0], [1], [0, 0, 1, 1], [], []>} : vector<8x32xbf16>, vector<32x128xbf16>, vector<8x128xf32> -> vector<8x128xf32>
      %263 = arith.addf %260, %262 : vector<8x128xf32>
      %264 = vector.extract_strided_slice %263 {offsets = [0, 0], sizes = [8, 32], strides = [1, 1]} : vector<8x128xf32> to vector<8x32xf32>
      %cst_82 = arith.constant 5.000000e-01 : f32
      %265 = vector.broadcast %cst_82 : f32 to vector<8x32xf32>
      %266 = arith.mulf %265, %264 : vector<8x32xf32>
      %267 = math.tanh %266 : vector<8x32xf32>
      %cst_83 = arith.constant 1.000000e+00 : f32
      %268 = vector.broadcast %cst_83 : f32 to vector<8x32xf32>
      %269 = arith.addf %267, %268 : vector<8x32xf32>
      %cst_84 = arith.constant 5.000000e-01 : f32
      %270 = vector.broadcast %cst_84 : f32 to vector<8x32xf32>
      %271 = arith.mulf %270, %269 : vector<8x32xf32>
      %272 = vector.extract_strided_slice %263 {offsets = [0, 32], sizes = [8, 32], strides = [1, 1]} : vector<8x128xf32> to vector<8x32xf32>
      %cst_85 = arith.constant 5.000000e-01 : f32
      %273 = vector.broadcast %cst_85 : f32 to vector<8x32xf32>
      %274 = arith.mulf %273, %272 : vector<8x32xf32>
      %275 = math.tanh %274 : vector<8x32xf32>
      %cst_86 = arith.constant 1.000000e+00 : f32
      %276 = vector.broadcast %cst_86 : f32 to vector<8x32xf32>
      %277 = arith.addf %275, %276 : vector<8x32xf32>
      %cst_87 = arith.constant 5.000000e-01 : f32
      %278 = vector.broadcast %cst_87 : f32 to vector<8x32xf32>
      %279 = arith.mulf %278, %277 : vector<8x32xf32>
      %280 = vector.extract_strided_slice %263 {offsets = [0, 64], sizes = [8, 32], strides = [1, 1]} : vector<8x128xf32> to vector<8x32xf32>
      %281 = math.tanh %280 : vector<8x32xf32>
      %282 = vector.extract_strided_slice %263 {offsets = [0, 96], sizes = [8, 32], strides = [1, 1]} : vector<8x128xf32> to vector<8x32xf32>
      %cst_88 = arith.constant 5.000000e-01 : f32
      %283 = vector.broadcast %cst_88 : f32 to vector<8x32xf32>
      %284 = arith.mulf %283, %282 : vector<8x32xf32>
      %285 = math.tanh %284 : vector<8x32xf32>
      %cst_89 = arith.constant 1.000000e+00 : f32
      %286 = vector.broadcast %cst_89 : f32 to vector<8x32xf32>
      %287 = arith.addf %285, %286 : vector<8x32xf32>
      %cst_90 = arith.constant 5.000000e-01 : f32
      %288 = vector.broadcast %cst_90 : f32 to vector<8x32xf32>
      %289 = arith.mulf %288, %287 : vector<8x32xf32>
      %290 = arith.mulf %279, %257 : vector<8x32xf32>
      %291 = arith.mulf %271, %281 : vector<8x32xf32>
      %292 = arith.addf %290, %291 : vector<8x32xf32>
      %293 = math.tanh %292 : vector<8x32xf32>
      %294 = arith.mulf %289, %293 : vector<8x32xf32>
      %295 = vector.extract_strided_slice %11 {offsets = [64, 0], sizes = [8, 128], strides = [1, 1]} : vector<80x128xf32> to vector<8x128xf32>
      %296 = arith.truncf %294 : vector<8x32xf32> to vector<8x32xbf16>
      %cst_91 = arith.constant dense<0.000000e+00> : vector<8x128xf32>
      %297 = tpu.matmul %296, %12, %cst_91 {dimension_numbers = #tpu.dot_dimension_numbers<[1], [0], [0], [1], [0, 0, 1, 1], [], []>} : vector<8x32xbf16>, vector<32x128xbf16>, vector<8x128xf32> -> vector<8x128xf32>
      %298 = arith.addf %295, %297 : vector<8x128xf32>
      %299 = vector.extract_strided_slice %298 {offsets = [0, 0], sizes = [8, 32], strides = [1, 1]} : vector<8x128xf32> to vector<8x32xf32>
      %cst_92 = arith.constant 5.000000e-01 : f32
      %300 = vector.broadcast %cst_92 : f32 to vector<8x32xf32>
      %301 = arith.mulf %300, %299 : vector<8x32xf32>
      %302 = math.tanh %301 : vector<8x32xf32>
      %cst_93 = arith.constant 1.000000e+00 : f32
      %303 = vector.broadcast %cst_93 : f32 to vector<8x32xf32>
      %304 = arith.addf %302, %303 : vector<8x32xf32>
      %cst_94 = arith.constant 5.000000e-01 : f32
      %305 = vector.broadcast %cst_94 : f32 to vector<8x32xf32>
      %306 = arith.mulf %305, %304 : vector<8x32xf32>
      %307 = vector.extract_strided_slice %298 {offsets = [0, 32], sizes = [8, 32], strides = [1, 1]} : vector<8x128xf32> to vector<8x32xf32>
      %cst_95 = arith.constant 5.000000e-01 : f32
      %308 = vector.broadcast %cst_95 : f32 to vector<8x32xf32>
      %309 = arith.mulf %308, %307 : vector<8x32xf32>
      %310 = math.tanh %309 : vector<8x32xf32>
      %cst_96 = arith.constant 1.000000e+00 : f32
      %311 = vector.broadcast %cst_96 : f32 to vector<8x32xf32>
      %312 = arith.addf %310, %311 : vector<8x32xf32>
      %cst_97 = arith.constant 5.000000e-01 : f32
      %313 = vector.broadcast %cst_97 : f32 to vector<8x32xf32>
      %314 = arith.mulf %313, %312 : vector<8x32xf32>
      %315 = vector.extract_strided_slice %298 {offsets = [0, 64], sizes = [8, 32], strides = [1, 1]} : vector<8x128xf32> to vector<8x32xf32>
      %316 = math.tanh %315 : vector<8x32xf32>
      %317 = vector.extract_strided_slice %298 {offsets = [0, 96], sizes = [8, 32], strides = [1, 1]} : vector<8x128xf32> to vector<8x32xf32>
      %cst_98 = arith.constant 5.000000e-01 : f32
      %318 = vector.broadcast %cst_98 : f32 to vector<8x32xf32>
      %319 = arith.mulf %318, %317 : vector<8x32xf32>
      %320 = math.tanh %319 : vector<8x32xf32>
      %cst_99 = arith.constant 1.000000e+00 : f32
      %321 = vector.broadcast %cst_99 : f32 to vector<8x32xf32>
      %322 = arith.addf %320, %321 : vector<8x32xf32>
      %cst_100 = arith.constant 5.000000e-01 : f32
      %323 = vector.broadcast %cst_100 : f32 to vector<8x32xf32>
      %324 = arith.mulf %323, %322 : vector<8x32xf32>
      %325 = arith.mulf %314, %292 : vector<8x32xf32>
      %326 = arith.mulf %306, %316 : vector<8x32xf32>
      %327 = arith.addf %325, %326 : vector<8x32xf32>
      %328 = math.tanh %327 : vector<8x32xf32>
      %329 = arith.mulf %324, %328 : vector<8x32xf32>
      %330 = vector.extract_strided_slice %11 {offsets = [72, 0], sizes = [8, 128], strides = [1, 1]} : vector<80x128xf32> to vector<8x128xf32>
      %331 = arith.truncf %329 : vector<8x32xf32> to vector<8x32xbf16>
      %cst_101 = arith.constant dense<0.000000e+00> : vector<8x128xf32>
      %332 = tpu.matmul %331, %12, %cst_101 {dimension_numbers = #tpu.dot_dimension_numbers<[1], [0], [0], [1], [0, 0, 1, 1], [], []>} : vector<8x32xbf16>, vector<32x128xbf16>, vector<8x128xf32> -> vector<8x128xf32>
      %333 = arith.addf %330, %332 : vector<8x128xf32>
      %334 = vector.extract_strided_slice %333 {offsets = [0, 0], sizes = [8, 32], strides = [1, 1]} : vector<8x128xf32> to vector<8x32xf32>
      %cst_102 = arith.constant 5.000000e-01 : f32
      %335 = vector.broadcast %cst_102 : f32 to vector<8x32xf32>
      %336 = arith.mulf %335, %334 : vector<8x32xf32>
      %337 = math.tanh %336 : vector<8x32xf32>
      %cst_103 = arith.constant 1.000000e+00 : f32
      %338 = vector.broadcast %cst_103 : f32 to vector<8x32xf32>
      %339 = arith.addf %337, %338 : vector<8x32xf32>
      %cst_104 = arith.constant 5.000000e-01 : f32
      %340 = vector.broadcast %cst_104 : f32 to vector<8x32xf32>
      %341 = arith.mulf %340, %339 : vector<8x32xf32>
      %342 = vector.extract_strided_slice %333 {offsets = [0, 32], sizes = [8, 32], strides = [1, 1]} : vector<8x128xf32> to vector<8x32xf32>
      %cst_105 = arith.constant 5.000000e-01 : f32
      %343 = vector.broadcast %cst_105 : f32 to vector<8x32xf32>
      %344 = arith.mulf %343, %342 : vector<8x32xf32>
      %345 = math.tanh %344 : vector<8x32xf32>
      %cst_106 = arith.constant 1.000000e+00 : f32
      %346 = vector.broadcast %cst_106 : f32 to vector<8x32xf32>
      %347 = arith.addf %345, %346 : vector<8x32xf32>
      %cst_107 = arith.constant 5.000000e-01 : f32
      %348 = vector.broadcast %cst_107 : f32 to vector<8x32xf32>
      %349 = arith.mulf %348, %347 : vector<8x32xf32>
      %350 = vector.extract_strided_slice %333 {offsets = [0, 64], sizes = [8, 32], strides = [1, 1]} : vector<8x128xf32> to vector<8x32xf32>
      %351 = math.tanh %350 : vector<8x32xf32>
      %352 = vector.extract_strided_slice %333 {offsets = [0, 96], sizes = [8, 32], strides = [1, 1]} : vector<8x128xf32> to vector<8x32xf32>
      %cst_108 = arith.constant 5.000000e-01 : f32
      %353 = vector.broadcast %cst_108 : f32 to vector<8x32xf32>
      %354 = arith.mulf %353, %352 : vector<8x32xf32>
      %355 = math.tanh %354 : vector<8x32xf32>
      %cst_109 = arith.constant 1.000000e+00 : f32
      %356 = vector.broadcast %cst_109 : f32 to vector<8x32xf32>
      %357 = arith.addf %355, %356 : vector<8x32xf32>
      %cst_110 = arith.constant 5.000000e-01 : f32
      %358 = vector.broadcast %cst_110 : f32 to vector<8x32xf32>
      %359 = arith.mulf %358, %357 : vector<8x32xf32>
      %360 = arith.mulf %349, %327 : vector<8x32xf32>
      %361 = arith.mulf %341, %351 : vector<8x32xf32>
      %362 = arith.addf %360, %361 : vector<8x32xf32>
      %363 = math.tanh %362 : vector<8x32xf32>
      %364 = arith.mulf %359, %363 : vector<8x32xf32>
      %365 = arith.truncf %364 : vector<8x32xf32> to vector<8x32xbf16>
      %c0_111 = arith.constant 0 : index
      %c0_112 = arith.constant 0 : index
      %366 = vector.load %arg7[%c0_111, %c0_112] : memref<32x128xbf16, #tpu.memory_space<vmem>>, vector<32x128xbf16>
      %cst_113 = arith.constant dense<0.000000e+00> : vector<8x128xf32>
      %367 = tpu.matmul %365, %366, %cst_113 {dimension_numbers = #tpu.dot_dimension_numbers<[1], [0], [0], [1], [0, 0, 1, 1], [], []>} : vector<8x32xbf16>, vector<32x128xbf16>, vector<8x128xf32> -> vector<8x128xf32>
      %c2 = arith.constant 2 : index
      %c0_114 = arith.constant 0 : index
      %368 = vector.load %arg11[%c2, %c0_114] : memref<8x128xf32, #tpu.memory_space<vmem>>, vector<1x128xf32>
      %369 = vector.broadcast %368 : vector<1x128xf32> to vector<8x128xf32>
      %370 = arith.addf %367, %369 : vector<8x128xf32>
      %cst_115 = arith.constant 0.000000e+00 : f32
      %371 = vector.broadcast %cst_115 : f32 to vector<8x128xf32>
      %372 = arith.maximumf %370, %371 : vector<8x128xf32>
      %373 = arith.truncf %372 : vector<8x128xf32> to vector<8x128xbf16>
      %c0_116 = arith.constant 0 : index
      %c0_117 = arith.constant 0 : index
      %374 = vector.load %arg9[%c0_116, %c0_117] : memref<128x128xbf16, #tpu.memory_space<vmem>>, vector<128x128xbf16>
      %cst_118 = arith.constant dense<0.000000e+00> : vector<8x128xf32>
      %375 = tpu.matmul %373, %374, %cst_118 {dimension_numbers = #tpu.dot_dimension_numbers<[1], [0], [0], [1], [0, 0, 1, 1], [], []>} : vector<8x128xbf16>, vector<128x128xbf16>, vector<8x128xf32> -> vector<8x128xf32>
      %c4 = arith.constant 4 : index
      %c0_119 = arith.constant 0 : index
      %376 = vector.load %arg11[%c4, %c0_119] : memref<8x128xf32, #tpu.memory_space<vmem>>, vector<1x128xf32>
      %377 = vector.broadcast %376 : vector<1x128xf32> to vector<8x128xf32>
      %378 = arith.addf %375, %377 : vector<8x128xf32>
      %c0_120 = arith.constant 0 : index
      %c0_121 = arith.constant 0 : index
      %c0_122 = arith.constant 0 : index
      %379 = vector.load %arg12[%c0_120, %c0_121, %c0_122] : memref<1x8x128xf32, #tpu.memory_space<vmem>>, vector<1x8x128xf32>
      %380 = vector.shape_cast %379 : vector<1x8x128xf32> to vector<8x128xf32>
      %381 = vector.shape_cast %378 : vector<8x128xf32> to vector<1x8x128xf32>
      tpu.vector_store %arg12[%c0_120, %c0_121, %c0_122], %381 {strides = array<i32>} : memref<1x8x128xf32, #tpu.memory_space<vmem>>, vector<1x8x128xf32>,
    } else {
    }
    %c1_i32 = arith.constant 1 : i32
    %3 = arith.cmpi eq, %arg0, %c1_i32 : i32
    %4 = arith.extui %3 : i1 to i32
    %c0_i32_1 = arith.constant 0 : i32
    %5 = arith.cmpi ne, %4, %c0_i32_1 : i32
    scf.if %5 {
      %c1 = arith.constant 1 : index
      %c0 = arith.constant 0 : index
      %6 = vector.load %arg11[%c1, %c0] : memref<8x128xf32, #tpu.memory_space<vmem>>, vector<1x128xf32>
      %c0_2 = arith.constant 0 : index
      %c0_3 = arith.constant 0 : index
      %7 = vector.load %arg2[%c0_2, %c0_3] : memref<64x16xbf16, #tpu.memory_space<vmem>>, vector<64x16xbf16>
      %c0_4 = arith.constant 0 : index
      %c0_5 = arith.constant 0 : index
      %8 = vector.load %arg5[%c0_4, %c0_5] : memref<16x128xbf16, #tpu.memory_space<vmem>>, vector<16x128xbf16>
      %cst = arith.constant dense<0.000000e+00> : vector<64x128xf32>
      %9 = tpu.matmul %7, %8, %cst {dimension_numbers = #tpu.dot_dimension_numbers<[1], [0], [0], [1], [0, 0, 1, 1], [], []>} : vector<64x16xbf16>, vector<16x128xbf16>, vector<64x128xf32> -> vector<64x128xf32>
      %10 = vector.broadcast %6 : vector<1x128xf32> to vector<64x128xf32>
      %11 = arith.addf %9, %10 : vector<64x128xf32>
      %c0_6 = arith.constant 0 : index
      %c0_7 = arith.constant 0 : index
      %12 = vector.load %arg6[%c0_6, %c0_7] : memref<32x128xbf16, #tpu.memory_space<vmem>>, vector<32x128xbf16>
      %cst_8 = arith.constant 0.000000e+00 : f32
      %13 = vector.broadcast %cst_8 : f32 to vector<8x32xf32>
      %cst_9 = arith.constant 0.000000e+00 : f32
      %14 = vector.broadcast %cst_9 : f32 to vector<8x32xf32>
      %15 = vector.extract_strided_slice %11 {offsets = [0, 0], sizes = [8, 128], strides = [1, 1]} : vector<64x128xf32> to vector<8x128xf32>
      %16 = arith.truncf %13 : vector<8x32xf32> to vector<8x32xbf16>
      %cst_10 = arith.constant dense<0.000000e+00> : vector<8x128xf32>
      %17 = tpu.matmul %16, %12, %cst_10 {dimension_numbers = #tpu.dot_dimension_numbers<[1], [0], [0], [1], [0, 0, 1, 1], [], []>} : vector<8x32xbf16>, vector<32x128xbf16>, vector<8x128xf32> -> vector<8x128xf32>
      %18 = arith.addf %15, %17 : vector<8x128xf32>
      %19 = vector.extract_strided_slice %18 {offsets = [0, 0], sizes = [8, 32], strides = [1, 1]} : vector<8x128xf32> to vector<8x32xf32>
      %cst_11 = arith.constant 5.000000e-01 : f32
      %20 = vector.broadcast %cst_11 : f32 to vector<8x32xf32>
      %21 = arith.mulf %20, %19 : vector<8x32xf32>
      %22 = math.tanh %21 : vector<8x32xf32>
      %cst_12 = arith.constant 1.000000e+00 : f32
      %23 = vector.broadcast %cst_12 : f32 to vector<8x32xf32>
      %24 = arith.addf %22, %23 : vector<8x32xf32>
      %cst_13 = arith.constant 5.000000e-01 : f32
      %25 = vector.broadcast %cst_13 : f32 to vector<8x32xf32>
      %26 = arith.mulf %25, %24 : vector<8x32xf32>
      %27 = vector.extract_strided_slice %18 {offsets = [0, 32], sizes = [8, 32], strides = [1, 1]} : vector<8x128xf32> to vector<8x32xf32>
      %cst_14 = arith.constant 5.000000e-01 : f32
      %28 = vector.broadcast %cst_14 : f32 to vector<8x32xf32>
      %29 = arith.mulf %28, %27 : vector<8x32xf32>
      %30 = math.tanh %29 : vector<8x32xf32>
      %cst_15 = arith.constant 1.000000e+00 : f32
      %31 = vector.broadcast %cst_15 : f32 to vector<8x32xf32>
      %32 = arith.addf %30, %31 : vector<8x32xf32>
      %cst_16 = arith.constant 5.000000e-01 : f32
      %33 = vector.broadcast %cst_16 : f32 to vector<8x32xf32>
      %34 = arith.mulf %33, %32 : vector<8x32xf32>
      %35 = vector.extract_strided_slice %18 {offsets = [0, 64], sizes = [8, 32], strides = [1, 1]} : vector<8x128xf32> to vector<8x32xf32>
      %36 = math.tanh %35 : vector<8x32xf32>
      %37 = vector.extract_strided_slice %18 {offsets = [0, 96], sizes = [8, 32], strides = [1, 1]} : vector<8x128xf32> to vector<8x32xf32>
      %cst_17 = arith.constant 5.000000e-01 : f32
      %38 = vector.broadcast %cst_17 : f32 to vector<8x32xf32>
      %39 = arith.mulf %38, %37 : vector<8x32xf32>
      %40 = math.tanh %39 : vector<8x32xf32>
      %cst_18 = arith.constant 1.000000e+00 : f32
      %41 = vector.broadcast %cst_18 : f32 to vector<8x32xf32>
      %42 = arith.addf %40, %41 : vector<8x32xf32>
      %cst_19 = arith.constant 5.000000e-01 : f32
      %43 = vector.broadcast %cst_19 : f32 to vector<8x32xf32>
      %44 = arith.mulf %43, %42 : vector<8x32xf32>
      %45 = arith.mulf %34, %14 : vector<8x32xf32>
      %46 = arith.mulf %26, %36 : vector<8x32xf32>
      %47 = arith.addf %45, %46 : vector<8x32xf32>
      %48 = math.tanh %47 : vector<8x32xf32>
      %49 = arith.mulf %44, %48 : vector<8x32xf32>
      %50 = arith.truncf %49 : vector<8x32xf32> to vector<8x32xbf16>
      %51 = vector.extract_strided_slice %11 {offsets = [8, 0], sizes = [8, 128], strides = [1, 1]} : vector<64x128xf32> to vector<8x128xf32>
      %52 = arith.truncf %49 : vector<8x32xf32> to vector<8x32xbf16>
      %cst_20 = arith.constant dense<0.000000e+00> : vector<8x128xf32>
      %53 = tpu.matmul %52, %12, %cst_20 {dimension_numbers = #tpu.dot_dimension_numbers<[1], [0], [0], [1], [0, 0, 1, 1], [], []>} : vector<8x32xbf16>, vector<32x128xbf16>, vector<8x128xf32> -> vector<8x128xf32>
      %54 = arith.addf %51, %53 : vector<8x128xf32>
      %55 = vector.extract_strided_slice %54 {offsets = [0, 0], sizes = [8, 32], strides = [1, 1]} : vector<8x128xf32> to vector<8x32xf32>
      %cst_21 = arith.constant 5.000000e-01 : f32
      %56 = vector.broadcast %cst_21 : f32 to vector<8x32xf32>
      %57 = arith.mulf %56, %55 : vector<8x32xf32>
      %58 = math.tanh %57 : vector<8x32xf32>
      %cst_22 = arith.constant 1.000000e+00 : f32
      %59 = vector.broadcast %cst_22 : f32 to vector<8x32xf32>
      %60 = arith.addf %58, %59 : vector<8x32xf32>
      %cst_23 = arith.constant 5.000000e-01 : f32
      %61 = vector.broadcast %cst_23 : f32 to vector<8x32xf32>
      %62 = arith.mulf %61, %60 : vector<8x32xf32>
      %63 = vector.extract_strided_slice %54 {offsets = [0, 32], sizes = [8, 32], strides = [1, 1]} : vector<8x128xf32> to vector<8x32xf32>
      %cst_24 = arith.constant 5.000000e-01 : f32
      %64 = vector.broadcast %cst_24 : f32 to vector<8x32xf32>
      %65 = arith.mulf %64, %63 : vector<8x32xf32>
      %66 = math.tanh %65 : vector<8x32xf32>
      %cst_25 = arith.constant 1.000000e+00 : f32
      %67 = vector.broadcast %cst_25 : f32 to vector<8x32xf32>
      %68 = arith.addf %66, %67 : vector<8x32xf32>
      %cst_26 = arith.constant 5.000000e-01 : f32
      %69 = vector.broadcast %cst_26 : f32 to vector<8x32xf32>
      %70 = arith.mulf %69, %68 : vector<8x32xf32>
      %71 = vector.extract_strided_slice %54 {offsets = [0, 64], sizes = [8, 32], strides = [1, 1]} : vector<8x128xf32> to vector<8x32xf32>
      %72 = math.tanh %71 : vector<8x32xf32>
      %73 = vector.extract_strided_slice %54 {offsets = [0, 96], sizes = [8, 32], strides = [1, 1]} : vector<8x128xf32> to vector<8x32xf32>
      %cst_27 = arith.constant 5.000000e-01 : f32
      %74 = vector.broadcast %cst_27 : f32 to vector<8x32xf32>
      %75 = arith.mulf %74, %73 : vector<8x32xf32>
      %76 = math.tanh %75 : vector<8x32xf32>
      %cst_28 = arith.constant 1.000000e+00 : f32
      %77 = vector.broadcast %cst_28 : f32 to vector<8x32xf32>
      %78 = arith.addf %76, %77 : vector<8x32xf32>
      %cst_29 = arith.constant 5.000000e-01 : f32
      %79 = vector.broadcast %cst_29 : f32 to vector<8x32xf32>
      %80 = arith.mulf %79, %78 : vector<8x32xf32>
      %81 = arith.mulf %70, %47 : vector<8x32xf32>
      %82 = arith.mulf %62, %72 : vector<8x32xf32>
      %83 = arith.addf %81, %82 : vector<8x32xf32>
      %84 = math.tanh %83 : vector<8x32xf32>
      %85 = arith.mulf %80, %84 : vector<8x32xf32>
      %86 = arith.truncf %85 : vector<8x32xf32> to vector<8x32xbf16>
      %87 = vector.extract_strided_slice %11 {offsets = [16, 0], sizes = [8, 128], strides = [1, 1]} : vector<64x128xf32> to vector<8x128xf32>
      %88 = arith.truncf %85 : vector<8x32xf32> to vector<8x32xbf16>
      %cst_30 = arith.constant dense<0.000000e+00> : vector<8x128xf32>
      %89 = tpu.matmul %88, %12, %cst_30 {dimension_numbers = #tpu.dot_dimension_numbers<[1], [0], [0], [1], [0, 0, 1, 1], [], []>} : vector<8x32xbf16>, vector<32x128xbf16>, vector<8x128xf32> -> vector<8x128xf32>
      %90 = arith.addf %87, %89 : vector<8x128xf32>
      %91 = vector.extract_strided_slice %90 {offsets = [0, 0], sizes = [8, 32], strides = [1, 1]} : vector<8x128xf32> to vector<8x32xf32>
      %cst_31 = arith.constant 5.000000e-01 : f32
      %92 = vector.broadcast %cst_31 : f32 to vector<8x32xf32>
      %93 = arith.mulf %92, %91 : vector<8x32xf32>
      %94 = math.tanh %93 : vector<8x32xf32>
      %cst_32 = arith.constant 1.000000e+00 : f32
      %95 = vector.broadcast %cst_32 : f32 to vector<8x32xf32>
      %96 = arith.addf %94, %95 : vector<8x32xf32>
      %cst_33 = arith.constant 5.000000e-01 : f32
      %97 = vector.broadcast %cst_33 : f32 to vector<8x32xf32>
      %98 = arith.mulf %97, %96 : vector<8x32xf32>
      %99 = vector.extract_strided_slice %90 {offsets = [0, 32], sizes = [8, 32], strides = [1, 1]} : vector<8x128xf32> to vector<8x32xf32>
      %cst_34 = arith.constant 5.000000e-01 : f32
      %100 = vector.broadcast %cst_34 : f32 to vector<8x32xf32>
      %101 = arith.mulf %100, %99 : vector<8x32xf32>
      %102 = math.tanh %101 : vector<8x32xf32>
      %cst_35 = arith.constant 1.000000e+00 : f32
      %103 = vector.broadcast %cst_35 : f32 to vector<8x32xf32>
      %104 = arith.addf %102, %103 : vector<8x32xf32>
      %cst_36 = arith.constant 5.000000e-01 : f32
      %105 = vector.broadcast %cst_36 : f32 to vector<8x32xf32>
      %106 = arith.mulf %105, %104 : vector<8x32xf32>
      %107 = vector.extract_strided_slice %90 {offsets = [0, 64], sizes = [8, 32], strides = [1, 1]} : vector<8x128xf32> to vector<8x32xf32>
      %108 = math.tanh %107 : vector<8x32xf32>
      %109 = vector.extract_strided_slice %90 {offsets = [0, 96], sizes = [8, 32], strides = [1, 1]} : vector<8x128xf32> to vector<8x32xf32>
      %cst_37 = arith.constant 5.000000e-01 : f32
      %110 = vector.broadcast %cst_37 : f32 to vector<8x32xf32>
      %111 = arith.mulf %110, %109 : vector<8x32xf32>
      %112 = math.tanh %111 : vector<8x32xf32>
      %cst_38 = arith.constant 1.000000e+00 : f32
      %113 = vector.broadcast %cst_38 : f32 to vector<8x32xf32>
      %114 = arith.addf %112, %113 : vector<8x32xf32>
      %cst_39 = arith.constant 5.000000e-01 : f32
      %115 = vector.broadcast %cst_39 : f32 to vector<8x32xf32>
      %116 = arith.mulf %115, %114 : vector<8x32xf32>
      %117 = arith.mulf %106, %83 : vector<8x32xf32>
      %118 = arith.mulf %98, %108 : vector<8x32xf32>
      %119 = arith.addf %117, %118 : vector<8x32xf32>
      %120 = math.tanh %119 : vector<8x32xf32>
      %121 = arith.mulf %116, %120 : vector<8x32xf32>
      %122 = arith.truncf %121 : vector<8x32xf32> to vector<8x32xbf16>
      %123 = vector.extract_strided_slice %11 {offsets = [24, 0], sizes = [8, 128], strides = [1, 1]} : vector<64x128xf32> to vector<8x128xf32>
      %124 = arith.truncf %121 : vector<8x32xf32> to vector<8x32xbf16>
      %cst_40 = arith.constant dense<0.000000e+00> : vector<8x128xf32>
      %125 = tpu.matmul %124, %12, %cst_40 {dimension_numbers = #tpu.dot_dimension_numbers<[1], [0], [0], [1], [0, 0, 1, 1], [], []>} : vector<8x32xbf16>, vector<32x128xbf16>, vector<8x128xf32> -> vector<8x128xf32>
      %126 = arith.addf %123, %125 : vector<8x128xf32>
      %127 = vector.extract_strided_slice %126 {offsets = [0, 0], sizes = [8, 32], strides = [1, 1]} : vector<8x128xf32> to vector<8x32xf32>
      %cst_41 = arith.constant 5.000000e-01 : f32
      %128 = vector.broadcast %cst_41 : f32 to vector<8x32xf32>
      %129 = arith.mulf %128, %127 : vector<8x32xf32>
      %130 = math.tanh %129 : vector<8x32xf32>
      %cst_42 = arith.constant 1.000000e+00 : f32
      %131 = vector.broadcast %cst_42 : f32 to vector<8x32xf32>
      %132 = arith.addf %130, %131 : vector<8x32xf32>
      %cst_43 = arith.constant 5.000000e-01 : f32
      %133 = vector.broadcast %cst_43 : f32 to vector<8x32xf32>
      %134 = arith.mulf %133, %132 : vector<8x32xf32>
      %135 = vector.extract_strided_slice %126 {offsets = [0, 32], sizes = [8, 32], strides = [1, 1]} : vector<8x128xf32> to vector<8x32xf32>
      %cst_44 = arith.constant 5.000000e-01 : f32
      %136 = vector.broadcast %cst_44 : f32 to vector<8x32xf32>
      %137 = arith.mulf %136, %135 : vector<8x32xf32>
      %138 = math.tanh %137 : vector<8x32xf32>
      %cst_45 = arith.constant 1.000000e+00 : f32
      %139 = vector.broadcast %cst_45 : f32 to vector<8x32xf32>
      %140 = arith.addf %138, %139 : vector<8x32xf32>
      %cst_46 = arith.constant 5.000000e-01 : f32
      %141 = vector.broadcast %cst_46 : f32 to vector<8x32xf32>
      %142 = arith.mulf %141, %140 : vector<8x32xf32>
      %143 = vector.extract_strided_slice %126 {offsets = [0, 64], sizes = [8, 32], strides = [1, 1]} : vector<8x128xf32> to vector<8x32xf32>
      %144 = math.tanh %143 : vector<8x32xf32>
      %145 = vector.extract_strided_slice %126 {offsets = [0, 96], sizes = [8, 32], strides = [1, 1]} : vector<8x128xf32> to vector<8x32xf32>
      %cst_47 = arith.constant 5.000000e-01 : f32
      %146 = vector.broadcast %cst_47 : f32 to vector<8x32xf32>
      %147 = arith.mulf %146, %145 : vector<8x32xf32>
      %148 = math.tanh %147 : vector<8x32xf32>
      %cst_48 = arith.constant 1.000000e+00 : f32
      %149 = vector.broadcast %cst_48 : f32 to vector<8x32xf32>
      %150 = arith.addf %148, %149 : vector<8x32xf32>
      %cst_49 = arith.constant 5.000000e-01 : f32
      %151 = vector.broadcast %cst_49 : f32 to vector<8x32xf32>
      %152 = arith.mulf %151, %150 : vector<8x32xf32>
      %153 = arith.mulf %142, %119 : vector<8x32xf32>
      %154 = arith.mulf %134, %144 : vector<8x32xf32>
      %155 = arith.addf %153, %154 : vector<8x32xf32>
      %156 = math.tanh %155 : vector<8x32xf32>
      %157 = arith.mulf %152, %156 : vector<8x32xf32>
      %158 = arith.truncf %157 : vector<8x32xf32> to vector<8x32xbf16>
      %159 = vector.extract_strided_slice %11 {offsets = [32, 0], sizes = [8, 128], strides = [1, 1]} : vector<64x128xf32> to vector<8x128xf32>
      %160 = arith.truncf %157 : vector<8x32xf32> to vector<8x32xbf16>
      %cst_50 = arith.constant dense<0.000000e+00> : vector<8x128xf32>
      %161 = tpu.matmul %160, %12, %cst_50 {dimension_numbers = #tpu.dot_dimension_numbers<[1], [0], [0], [1], [0, 0, 1, 1], [], []>} : vector<8x32xbf16>, vector<32x128xbf16>, vector<8x128xf32> -> vector<8x128xf32>
      %162 = arith.addf %159, %161 : vector<8x128xf32>
      %163 = vector.extract_strided_slice %162 {offsets = [0, 0], sizes = [8, 32], strides = [1, 1]} : vector<8x128xf32> to vector<8x32xf32>
      %cst_51 = arith.constant 5.000000e-01 : f32
      %164 = vector.broadcast %cst_51 : f32 to vector<8x32xf32>
      %165 = arith.mulf %164, %163 : vector<8x32xf32>
      %166 = math.tanh %165 : vector<8x32xf32>
      %cst_52 = arith.constant 1.000000e+00 : f32
      %167 = vector.broadcast %cst_52 : f32 to vector<8x32xf32>
      %168 = arith.addf %166, %167 : vector<8x32xf32>
      %cst_53 = arith.constant 5.000000e-01 : f32
      %169 = vector.broadcast %cst_53 : f32 to vector<8x32xf32>
      %170 = arith.mulf %169, %168 : vector<8x32xf32>
      %171 = vector.extract_strided_slice %162 {offsets = [0, 32], sizes = [8, 32], strides = [1, 1]} : vector<8x128xf32> to vector<8x32xf32>
      %cst_54 = arith.constant 5.000000e-01 : f32
      %172 = vector.broadcast %cst_54 : f32 to vector<8x32xf32>
      %173 = arith.mulf %172, %171 : vector<8x32xf32>
      %174 = math.tanh %173 : vector<8x32xf32>
      %cst_55 = arith.constant 1.000000e+00 : f32
      %175 = vector.broadcast %cst_55 : f32 to vector<8x32xf32>
      %176 = arith.addf %174, %175 : vector<8x32xf32>
      %cst_56 = arith.constant 5.000000e-01 : f32
      %177 = vector.broadcast %cst_56 : f32 to vector<8x32xf32>
      %178 = arith.mulf %177, %176 : vector<8x32xf32>
      %179 = vector.extract_strided_slice %162 {offsets = [0, 64], sizes = [8, 32], strides = [1, 1]} : vector<8x128xf32> to vector<8x32xf32>
      %180 = math.tanh %179 : vector<8x32xf32>
      %181 = vector.extract_strided_slice %162 {offsets = [0, 96], sizes = [8, 32], strides = [1, 1]} : vector<8x128xf32> to vector<8x32xf32>
      %cst_57 = arith.constant 5.000000e-01 : f32
      %182 = vector.broadcast %cst_57 : f32 to vector<8x32xf32>
      %183 = arith.mulf %182, %181 : vector<8x32xf32>
      %184 = math.tanh %183 : vector<8x32xf32>
      %cst_58 = arith.constant 1.000000e+00 : f32
      %185 = vector.broadcast %cst_58 : f32 to vector<8x32xf32>
      %186 = arith.addf %184, %185 : vector<8x32xf32>
      %cst_59 = arith.constant 5.000000e-01 : f32
      %187 = vector.broadcast %cst_59 : f32 to vector<8x32xf32>
      %188 = arith.mulf %187, %186 : vector<8x32xf32>
      %189 = arith.mulf %178, %155 : vector<8x32xf32>
      %190 = arith.mulf %170, %180 : vector<8x32xf32>
      %191 = arith.addf %189, %190 : vector<8x32xf32>
      %192 = math.tanh %191 : vector<8x32xf32>
      %193 = arith.mulf %188, %192 : vector<8x32xf32>
      %194 = arith.truncf %193 : vector<8x32xf32> to vector<8x32xbf16>
      %195 = vector.extract_strided_slice %11 {offsets = [40, 0], sizes = [8, 128], strides = [1, 1]} : vector<64x128xf32> to vector<8x128xf32>
      %196 = arith.truncf %193 : vector<8x32xf32> to vector<8x32xbf16>
      %cst_60 = arith.constant dense<0.000000e+00> : vector<8x128xf32>
      %197 = tpu.matmul %196, %12, %cst_60 {dimension_numbers = #tpu.dot_dimension_numbers<[1], [0], [0], [1], [0, 0, 1, 1], [], []>} : vector<8x32xbf16>, vector<32x128xbf16>, vector<8x128xf32> -> vector<8x128xf32>
      %198 = arith.addf %195, %197 : vector<8x128xf32>
      %199 = vector.extract_strided_slice %198 {offsets = [0, 0], sizes = [8, 32], strides = [1, 1]} : vector<8x128xf32> to vector<8x32xf32>
      %cst_61 = arith.constant 5.000000e-01 : f32
      %200 = vector.broadcast %cst_61 : f32 to vector<8x32xf32>
      %201 = arith.mulf %200, %199 : vector<8x32xf32>
      %202 = math.tanh %201 : vector<8x32xf32>
      %cst_62 = arith.constant 1.000000e+00 : f32
      %203 = vector.broadcast %cst_62 : f32 to vector<8x32xf32>
      %204 = arith.addf %202, %203 : vector<8x32xf32>
      %cst_63 = arith.constant 5.000000e-01 : f32
      %205 = vector.broadcast %cst_63 : f32 to vector<8x32xf32>
      %206 = arith.mulf %205, %204 : vector<8x32xf32>
      %207 = vector.extract_strided_slice %198 {offsets = [0, 32], sizes = [8, 32], strides = [1, 1]} : vector<8x128xf32> to vector<8x32xf32>
      %cst_64 = arith.constant 5.000000e-01 : f32
      %208 = vector.broadcast %cst_64 : f32 to vector<8x32xf32>
      %209 = arith.mulf %208, %207 : vector<8x32xf32>
      %210 = math.tanh %209 : vector<8x32xf32>
      %cst_65 = arith.constant 1.000000e+00 : f32
      %211 = vector.broadcast %cst_65 : f32 to vector<8x32xf32>
      %212 = arith.addf %210, %211 : vector<8x32xf32>
      %cst_66 = arith.constant 5.000000e-01 : f32
      %213 = vector.broadcast %cst_66 : f32 to vector<8x32xf32>
      %214 = arith.mulf %213, %212 : vector<8x32xf32>
      %215 = vector.extract_strided_slice %198 {offsets = [0, 64], sizes = [8, 32], strides = [1, 1]} : vector<8x128xf32> to vector<8x32xf32>
      %216 = math.tanh %215 : vector<8x32xf32>
      %217 = vector.extract_strided_slice %198 {offsets = [0, 96], sizes = [8, 32], strides = [1, 1]} : vector<8x128xf32> to vector<8x32xf32>
      %cst_67 = arith.constant 5.000000e-01 : f32
      %218 = vector.broadcast %cst_67 : f32 to vector<8x32xf32>
      %219 = arith.mulf %218, %217 : vector<8x32xf32>
      %220 = math.tanh %219 : vector<8x32xf32>
      %cst_68 = arith.constant 1.000000e+00 : f32
      %221 = vector.broadcast %cst_68 : f32 to vector<8x32xf32>
      %222 = arith.addf %220, %221 : vector<8x32xf32>
      %cst_69 = arith.constant 5.000000e-01 : f32
      %223 = vector.broadcast %cst_69 : f32 to vector<8x32xf32>
      %224 = arith.mulf %223, %222 : vector<8x32xf32>
      %225 = arith.mulf %214, %191 : vector<8x32xf32>
      %226 = arith.mulf %206, %216 : vector<8x32xf32>
      %227 = arith.addf %225, %226 : vector<8x32xf32>
      %228 = math.tanh %227 : vector<8x32xf32>
      %229 = arith.mulf %224, %228 : vector<8x32xf32>
      %230 = arith.truncf %229 : vector<8x32xf32> to vector<8x32xbf16>
      %231 = vector.extract_strided_slice %11 {offsets = [48, 0], sizes = [8, 128], strides = [1, 1]} : vector<64x128xf32> to vector<8x128xf32>
      %232 = arith.truncf %229 : vector<8x32xf32> to vector<8x32xbf16>
      %cst_70 = arith.constant dense<0.000000e+00> : vector<8x128xf32>
      %233 = tpu.matmul %232, %12, %cst_70 {dimension_numbers = #tpu.dot_dimension_numbers<[1], [0], [0], [1], [0, 0, 1, 1], [], []>} : vector<8x32xbf16>, vector<32x128xbf16>, vector<8x128xf32> -> vector<8x128xf32>
      %234 = arith.addf %231, %233 : vector<8x128xf32>
      %235 = vector.extract_strided_slice %234 {offsets = [0, 0], sizes = [8, 32], strides = [1, 1]} : vector<8x128xf32> to vector<8x32xf32>
      %cst_71 = arith.constant 5.000000e-01 : f32
      %236 = vector.broadcast %cst_71 : f32 to vector<8x32xf32>
      %237 = arith.mulf %236, %235 : vector<8x32xf32>
      %238 = math.tanh %237 : vector<8x32xf32>
      %cst_72 = arith.constant 1.000000e+00 : f32
      %239 = vector.broadcast %cst_72 : f32 to vector<8x32xf32>
      %240 = arith.addf %238, %239 : vector<8x32xf32>
      %cst_73 = arith.constant 5.000000e-01 : f32
      %241 = vector.broadcast %cst_73 : f32 to vector<8x32xf32>
      %242 = arith.mulf %241, %240 : vector<8x32xf32>
      %243 = vector.extract_strided_slice %234 {offsets = [0, 32], sizes = [8, 32], strides = [1, 1]} : vector<8x128xf32> to vector<8x32xf32>
      %cst_74 = arith.constant 5.000000e-01 : f32
      %244 = vector.broadcast %cst_74 : f32 to vector<8x32xf32>
      %245 = arith.mulf %244, %243 : vector<8x32xf32>
      %246 = math.tanh %245 : vector<8x32xf32>
      %cst_75 = arith.constant 1.000000e+00 : f32
      %247 = vector.broadcast %cst_75 : f32 to vector<8x32xf32>
      %248 = arith.addf %246, %247 : vector<8x32xf32>
      %cst_76 = arith.constant 5.000000e-01 : f32
      %249 = vector.broadcast %cst_76 : f32 to vector<8x32xf32>
      %250 = arith.mulf %249, %248 : vector<8x32xf32>
      %251 = vector.extract_strided_slice %234 {offsets = [0, 64], sizes = [8, 32], strides = [1, 1]} : vector<8x128xf32> to vector<8x32xf32>
      %252 = math.tanh %251 : vector<8x32xf32>
      %253 = vector.extract_strided_slice %234 {offsets = [0, 96], sizes = [8, 32], strides = [1, 1]} : vector<8x128xf32> to vector<8x32xf32>
      %cst_77 = arith.constant 5.000000e-01 : f32
      %254 = vector.broadcast %cst_77 : f32 to vector<8x32xf32>
      %255 = arith.mulf %254, %253 : vector<8x32xf32>
      %256 = math.tanh %255 : vector<8x32xf32>
      %cst_78 = arith.constant 1.000000e+00 : f32
      %257 = vector.broadcast %cst_78 : f32 to vector<8x32xf32>
      %258 = arith.addf %256, %257 : vector<8x32xf32>
      %cst_79 = arith.constant 5.000000e-01 : f32
      %259 = vector.broadcast %cst_79 : f32 to vector<8x32xf32>
      %260 = arith.mulf %259, %258 : vector<8x32xf32>
      %261 = arith.mulf %250, %227 : vector<8x32xf32>
      %262 = arith.mulf %242, %252 : vector<8x32xf32>
      %263 = arith.addf %261, %262 : vector<8x32xf32>
      %264 = math.tanh %263 : vector<8x32xf32>
      %265 = arith.mulf %260, %264 : vector<8x32xf32>
      %266 = arith.truncf %265 : vector<8x32xf32> to vector<8x32xbf16>
      %267 = vector.extract_strided_slice %11 {offsets = [56, 0], sizes = [8, 128], strides = [1, 1]} : vector<64x128xf32> to vector<8x128xf32>
      %268 = arith.truncf %265 : vector<8x32xf32> to vector<8x32xbf16>
      %cst_80 = arith.constant dense<0.000000e+00> : vector<8x128xf32>
      %269 = tpu.matmul %268, %12, %cst_80 {dimension_numbers = #tpu.dot_dimension_numbers<[1], [0], [0], [1], [0, 0, 1, 1], [], []>} : vector<8x32xbf16>, vector<32x128xbf16>, vector<8x128xf32> -> vector<8x128xf32>
      %270 = arith.addf %267, %269 : vector<8x128xf32>
      %271 = vector.extract_strided_slice %270 {offsets = [0, 0], sizes = [8, 32], strides = [1, 1]} : vector<8x128xf32> to vector<8x32xf32>
      %cst_81 = arith.constant 5.000000e-01 : f32
      %272 = vector.broadcast %cst_81 : f32 to vector<8x32xf32>
      %273 = arith.mulf %272, %271 : vector<8x32xf32>
      %274 = math.tanh %273 : vector<8x32xf32>
      %cst_82 = arith.constant 1.000000e+00 : f32
      %275 = vector.broadcast %cst_82 : f32 to vector<8x32xf32>
      %276 = arith.addf %274, %275 : vector<8x32xf32>
      %cst_83 = arith.constant 5.000000e-01 : f32
      %277 = vector.broadcast %cst_83 : f32 to vector<8x32xf32>
      %278 = arith.mulf %277, %276 : vector<8x32xf32>
      %279 = vector.extract_strided_slice %270 {offsets = [0, 32], sizes = [8, 32], strides = [1, 1]} : vector<8x128xf32> to vector<8x32xf32>
      %cst_84 = arith.constant 5.000000e-01 : f32
      %280 = vector.broadcast %cst_84 : f32 to vector<8x32xf32>
      %281 = arith.mulf %280, %279 : vector<8x32xf32>
      %282 = math.tanh %281 : vector<8x32xf32>
      %cst_85 = arith.constant 1.000000e+00 : f32
      %283 = vector.broadcast %cst_85 : f32 to vector<8x32xf32>
      %284 = arith.addf %282, %283 : vector<8x32xf32>
      %cst_86 = arith.constant 5.000000e-01 : f32
      %285 = vector.broadcast %cst_86 : f32 to vector<8x32xf32>
      %286 = arith.mulf %285, %284 : vector<8x32xf32>
      %287 = vector.extract_strided_slice %270 {offsets = [0, 64], sizes = [8, 32], strides = [1, 1]} : vector<8x128xf32> to vector<8x32xf32>
      %288 = math.tanh %287 : vector<8x32xf32>
      %289 = vector.extract_strided_slice %270 {offsets = [0, 96], sizes = [8, 32], strides = [1, 1]} : vector<8x128xf32> to vector<8x32xf32>
      %cst_87 = arith.constant 5.000000e-01 : f32
      %290 = vector.broadcast %cst_87 : f32 to vector<8x32xf32>
      %291 = arith.mulf %290, %289 : vector<8x32xf32>
      %292 = math.tanh %291 : vector<8x32xf32>
      %cst_88 = arith.constant 1.000000e+00 : f32
      %293 = vector.broadcast %cst_88 : f32 to vector<8x32xf32>
      %294 = arith.addf %292, %293 : vector<8x32xf32>
      %cst_89 = arith.constant 5.000000e-01 : f32
      %295 = vector.broadcast %cst_89 : f32 to vector<8x32xf32>
      %296 = arith.mulf %295, %294 : vector<8x32xf32>
      %297 = arith.mulf %286, %263 : vector<8x32xf32>
      %298 = arith.mulf %278, %288 : vector<8x32xf32>
      %299 = arith.addf %297, %298 : vector<8x32xf32>
      %300 = math.tanh %299 : vector<8x32xf32>
      %301 = arith.mulf %296, %300 : vector<8x32xf32>
      %302 = arith.truncf %301 : vector<8x32xf32> to vector<8x32xbf16>
      %303 = tpu.concatenate %50, %86, %122, %158, %194, %230, %266, %302 in 1 : vector<8x32xbf16>, vector<8x32xbf16>, vector<8x32xbf16>, vector<8x32xbf16>, vector<8x32xbf16>, vector<8x32xbf16>, vector<8x32xbf16>, vector<8x32xbf16> -> vector<8x256xbf16>
      %c0_90 = arith.constant 0 : index
      %c0_91 = arith.constant 0 : index
      %304 = vector.load %arg8[%c0_90, %c0_91] : memref<256x128xbf16, #tpu.memory_space<vmem>>, vector<256x128xbf16>
      %cst_92 = arith.constant dense<0.000000e+00> : vector<8x128xf32>
      %305 = tpu.matmul %303, %304, %cst_92 {dimension_numbers = #tpu.dot_dimension_numbers<[1], [0], [0], [1], [0, 0, 1, 1], [], []>} : vector<8x256xbf16>, vector<256x128xbf16>, vector<8x128xf32> -> vector<8x128xf32>
      %c3 = arith.constant 3 : index
      %c0_93 = arith.constant 0 : index
      %306 = vector.load %arg11[%c3, %c0_93] : memref<8x128xf32, #tpu.memory_space<vmem>>, vector<1x128xf32>
      %307 = vector.broadcast %306 : vector<1x128xf32> to vector<8x128xf32>
      %308 = arith.addf %305, %307 : vector<8x128xf32>
      %cst_94 = arith.constant 0.000000e+00 : f32
      %309 = vector.broadcast %cst_94 : f32 to vector<8x128xf32>
      %310 = arith.maximumf %308, %309 : vector<8x128xf32>
      %311 = arith.truncf %310 : vector<8x128xf32> to vector<8x128xbf16>
      %c0_95 = arith.constant 0 : index
      %c0_96 = arith.constant 0 : index
      %312 = vector.load %arg10[%c0_95, %c0_96] : memref<128x128xbf16, #tpu.memory_space<vmem>>, vector<128x128xbf16>
      %cst_97 = arith.constant dense<0.000000e+00> : vector<8x128xf32>
      %313 = tpu.matmul %311, %312, %cst_97 {dimension_numbers = #tpu.dot_dimension_numbers<[1], [0], [0], [1], [0, 0, 1, 1], [], []>} : vector<8x128xbf16>, vector<128x128xbf16>, vector<8x128xf32> -> vector<8x128xf32>
      %c0_98 = arith.constant 0 : index
      %c0_99 = arith.constant 0 : index
      %c0_100 = arith.constant 0 : index
      %314 = vector.load %arg12[%c0_98, %c0_99, %c0_100] : memref<1x8x128xf32, #tpu.memory_space<vmem>>, vector<1x8x128xf32>
      %315 = vector.shape_cast %314 : vector<1x8x128xf32> to vector<8x128xf32>
      %316 = vector.shape_cast %313 : vector<8x128xf32> to vector<1x8x128xf32>
      tpu.vector_store %arg12[%c0_98, %c0_99, %c0_100], %316 {strides = array<i32>} : memref<1x8x128xf32, #tpu.memory_space<vmem>>, vector<1x8x128xf32>,
    } else {
    }
    return
  }
  func.func @transform_0(%arg0: i32) -> (i32, i32) {
    %c0_i32 = arith.constant 0 : i32
    %c0_i32_0 = arith.constant 0 : i32
    %c0_i32_1 = arith.constant 0 : i32
    return %c0_i32, %c0_i32_0 : i32, i32
  }
  func.func @transform_1(%arg0: i32) -> (i32, i32) {
    %c0_i32 = arith.constant 0 : i32
    %c0_i32_0 = arith.constant 0 : i32
    %c0_i32_1 = arith.constant 0 : i32
    return %c0_i32, %c0_i32_0 : i32, i32
  }
  func.func @transform_2(%arg0: i32) -> (i32, i32) {
    %c0_i32 = arith.constant 0 : i32
    %c0_i32_0 = arith.constant 0 : i32
    %c0_i32_1 = arith.constant 0 : i32
    return %c0_i32, %c0_i32_0 : i32, i32
  }
  func.func @transform_3(%arg0: i32) -> (i32, i32) {
    %c0_i32 = arith.constant 0 : i32
    %c0_i32_0 = arith.constant 0 : i32
    %c0_i32_1 = arith.constant 0 : i32
    return %c0_i32, %c0_i32_0 : i32, i32
  }
  func.func @transform_4(%arg0: i32) -> (i32, i32) {
    %c0_i32 = arith.constant 0 : i32
    %c0_i32_0 = arith.constant 0 : i32
    %c0_i32_1 = arith.constant 0 : i32
    return %c0_i32, %c0_i32_0 : i32, i32
  }
  func.func @transform_5(%arg0: i32) -> (i32, i32) {
    %c0_i32 = arith.constant 0 : i32
    %c0_i32_0 = arith.constant 0 : i32
    %c0_i32_1 = arith.constant 0 : i32
    return %c0_i32, %c0_i32_0 : i32, i32
  }
  func.func @transform_6(%arg0: i32) -> (i32, i32) {
    %c0_i32 = arith.constant 0 : i32
    %c0_i32_0 = arith.constant 0 : i32
    %c0_i32_1 = arith.constant 0 : i32
    return %c0_i32, %c0_i32_0 : i32, i32
  }
  func.func @transform_7(%arg0: i32) -> (i32, i32) {
    %c0_i32 = arith.constant 0 : i32
    %c0_i32_0 = arith.constant 0 : i32
    %c0_i32_1 = arith.constant 0 : i32
    return %c0_i32, %c0_i32_0 : i32, i32
  }
  func.func @transform_8(%arg0: i32) -> (i32, i32) {
    %c0_i32 = arith.constant 0 : i32
    %c0_i32_0 = arith.constant 0 : i32
    %c0_i32_1 = arith.constant 0 : i32
    return %c0_i32, %c0_i32_0 : i32, i32
  }
  func.func @transform_9(%arg0: i32) -> (i32, i32) {
    %c0_i32 = arith.constant 0 : i32
    %c0_i32_0 = arith.constant 0 : i32
    %c0_i32_1 = arith.constant 0 : i32
    return %c0_i32, %c0_i32_0 : i32, i32
  }
  func.func @transform_10(%arg0: i32) -> (i32, i32) {
    %c0_i32 = arith.constant 0 : i32
    %c0_i32_0 = arith.constant 0 : i32
    %c0_i32_1 = arith.constant 0 : i32
    return %c0_i32, %c0_i32_0 : i32, i32
  }
  func.func @transform_11(%arg0: i32) -> (i32, i32, i32) {
    %c0_i32 = arith.constant 0 : i32
    %c0_i32_0 = arith.constant 0 : i32
    %c0_i32_1 = arith.constant 0 : i32
    return %arg0, %c0_i32, %c0_i32_0 : i32, i32, i32
  }
}

</mosaic_0001>

<bundles_post_ra>
// kernel: forward_pallas.1
= control target key start
LH: loop header
LB: loop body
LE: loop exit
PB: predicated region body
PF: predicated region fallthrough
CT: control target
= control target key end

     0   :  { %s2280_s17 = smov 0   ;;  %s2640_s0 = inlined_call_operand.vmem [shape: bf16[80,32], index: 0, kind: input, shape index: {}]   ;;  %s2641_s1 = inlined_call_operand.vmem [shape: bf16[64,16], index: 1, kind: input, shape index: {}]   ;;  %s2642_s2 = inlined_call_operand.vmem [shape: bf16[32,128], index: 2, kind: input, shape index: {}]   ;;  %s2643_s3 = inlined_call_operand.vmem [shape: bf16[32,128], index: 3, kind: input, shape index: {}]   ;;  %s2644_s4 = inlined_call_operand.vmem [shape: bf16[16,128], index: 4, kind: input, shape index: {}]   ;;  %s2645_s5 = inlined_call_operand.vmem [shape: bf16[32,128], index: 5, kind: input, shape index: {}]   ;;  %s2646_s6 = inlined_call_operand.vmem [shape: bf16[32,128], index: 6, kind: input, shape index: {}]   ;;  %s2647_s7 = inlined_call_operand.vmem [shape: bf16[256,128], index: 7, kind: input, shape index: {}]   ;;  %s2648_s8 = inlined_call_operand.vmem [shape: bf16[128,128], index: 8, kind: input, shape index: {}]   ;;  %s2649_s9 = inlined_call_operand.vmem [shape: bf16[128,128], index: 9, kind: input, shape index: {}]   ;;  %s2650_s10 = inlined_call_operand.vmem [shape: f32[8,128], index: 10, kind: input, shape index: {}]   ;;  %s2651_s11 = inlined_call_operand.vmem [shape: f32[2,8,128], index: 11, kind: output, shape index: {}]  }
   0x1 LB: > { %s2286_s18 = sadd.s32 4294967295, %s2211_s17   ;;  %p1795_p0 = scmp.ge.s32.totalorder %s2211_s17, 1  ;;  %s2211_s17 = sphi %s2280_s17, %s21_s17  }
   0x2   : > { %p327_p1 = scmp.lt.s32.totalorder %s2211_s17, 3 }
   0x4   : > { %p328_p2 = pnand %p1795_p0, %p327_p1 }
   0x5   : > { %p361_p3 = scmp.lt.s32.totalorder (!%p328_p2), %s2286_s18, 1  ;;  %p1797_p4 = scmp.ne.s32.totalorder (!%p328_p2), %s2286_s18, 0 }
   0x6   : > { %331 = sbr.rel (%p328_p2) target bundleno = 10976 (0x2ae0), region = 64 }
   0xb   : > { %s362_s19 = scalar_select %p361_p3, %s2286_s18, 1 }
   0xc   : > { %369 = sbr.rel (%p1797_p4) target bundleno = 6129 (0x17f1), region = 68 }
   0xd   : > { %s1796_s20 = sshll.u32 %s362_s19, 3  ;;  %s2214_s19 = smov (!%p1797_p4), 64  }
   0xe   : > { %s2295_s23 = scalar_lea.vmem %s2651_s11, %s1796_s20  ;;  %s2215_s20 = smov (!%p1797_p4), 32  }
  0x11   : > { %v2033_v0 = vld [vmem:[%s2642_s2 + $0x8] sm:$0xff]  ;;  %v2032_v2 = vld [vmem:[%s2642_s2] sm:$0xff]  ;;  %vm423_vm0 = vcmask 261120   ;;  %v2213_v5 = vmov 0  }
  0x12   : > { %v2304_v1 = vld [vmem:[%s2643_s3 + $0x8] sm:$0xff]  ;;  %445 = vmatpush.bf16.msra.mxu0 %v2033_v0  ;;  %v2313_v3 = vld [vmem:[%s2643_s3] sm:$0xff] }
  0x13   : > { %498 = vmatpush.bf16.msra.mxu1 %v2304_v1  ;;  %541 = vmatpush.bf16.msra.mxu2 %v2304_v1  ;;  %v2027_v4 = vld [vmem:[%s2640_s0] sm:$0xff]  ;;  %v2028_v43 = vld [vmem:[%s2640_s0 + $0x8] sm:$0xff] }
  0x14   : > { %584 = vmatpush.bf16.msra.mxu3 %v2304_v1  ;;  %v2335_v6 = vld [vmem:[%s2650_s10] ss:$0 sm:$0xff] }
  0x16   : > { %446 = vmatpush.bf16.msra.mxu0 %v2032_v2 }
  0x17   : > { %499 = vmatpush.bf16.msra.mxu1 %v2313_v3  ;;  %542 = vmatpush.bf16.msra.mxu2 %v2313_v3 }
  0x18   : > { %585 = vmatpush.bf16.msra.mxu3 %v2313_v3 }
  0x19   : > { %1826 = vmatmul.msk.bf16.vlgmr.msra.gmra.mxu0 %vm423_vm0, %v2027_v4 }
  0x1a   : > { %500 = vmatmul.bf16.vlgmr.msra.gmra.mxu1 %v2213_v5 }
  0x1b   : > { %627 = vmatpush.bf16.msrb.mxu1 %v2304_v1  ;;  %670 = vmatpush.bf16.msrb.mxu2 %v2304_v1 }
  0x1c   : > { %713 = vmatpush.bf16.msrb.mxu3 %v2304_v1 }
  0x1f   : > { %628 = vmatpush.bf16.msrb.mxu1 %v2313_v3  ;;  %671 = vmatpush.bf16.msrb.mxu2 %v2313_v3 }
  0x20   : > { %714 = vmatpush.bf16.msrb.mxu3 %v2313_v3 }
  0x23   : > { %756 = vmatpush.bf16.msra.mxu1 %v2304_v1 }
  0x27   : > { %757 = vmatpush.bf16.msra.mxu1 %v2313_v3 }
  0x29   : > { %1827 = vmatmul.msk.bf16.gmra.mxu0 %vm423_vm0, %v2028_v43 }
  0x96   : > { %v448_v7 = vpop.f32.mrf.mxu0 }
  0x97   : > { %v501_v8 = vpop.f32.mrf.mxu1  ;;  %v449_v9 = vadd.f32 %v2335_v6, %v448_v7 }
  0x99   : > { %v505_v10 = vadd.f32 %v501_v8, %v449_v9 }
  0x9b   : > { %2095 = vtanh.f32 %v505_v10  ;;  %v506_v13 = vmul.f32 0.5, %v505_v10 }
  0x9d   : > { %2097 = vtanh.f32 %v506_v13 }
  0x9e   : > { %v450_v27 = vpop.f32.mrf.mxu0 }
  0x9f   : > { %v503_v11 = vpop.f32.mrf.mxu1  ;;  %v451_v28 = vadd.f32 %v2335_v6, %v450_v27 }
  0xa1   : > { %v2096_v12 = vpop.eup %2095 }
  0xa2   : > { %513 = vrot.lane.b32.xlu0 %v2096_v12, %s2214_s19 }
  0xa3   : > { %v2098_v14 = vpop.eup %2097 }
  0xa4   : > { %v508_v15 = vadd.f32 1.0, %v2098_v14 }
  0xa6   : > { %v509_v16 = vmul.f32 0.5, %v508_v15  ;;  %v453_v48 = vpop.f32.mrf.mxu0 }
  0xa7   : > { %v454_v49 = vadd.f32 %v2335_v6, %v453_v48 }
  0xa8   : > { %v511_v19 = vmul.f32 0.0, %v509_v16 }
  0xae   : > { %v455_v7 = vpop.f32.mrf.mxu0 }
  0xaf   : > { %v456_v8 = vadd.f32 %v2335_v6, %v455_v7 }
 0x114   : > { %v514_v17 = vpop.permute.xlu0 %513 }
 0x115   : > { %v516_v18 = vmul.f32 %v514_v17, %v509_v16 }
 0x117   : > { %518 = vrot.lane.b32.xlu0 %v516_v18, %s2215_s20 }
 0x189   : > { %v519_v20 = vpop.permute.xlu0 %518 }
 0x18a   : > { %v521_v21 = vadd.f32 %v519_v20, %v511_v19 }
 0x18c   : > { %2099 = vtanh.f32 %v521_v21 }
 0x192   : > { %v2100_v22 = vpop.eup %2099 }
 0x193   : > { %524 = vrot.lane.b32.xlu1 %v2100_v22, %s2214_s19 }
 0x205   : > { %v525_v23 = vpop.permute.xlu1 %524 }
 0x206   : > { %v527_v24 = vmul.f32 %v525_v23, %v509_v16 }
 0x208   : > { %v528_v25 = vpack.c.bf16 %v527_v24, %v527_v24 }
 0x20a   : > { %530 = vrot.lane.b32.xlu1 %v528_v25, %s2215_s20 }
 0x27c   : > { %v531_v26 = vpop.permute.xlu1 %530 }
 0x27d   : > { %1839 = vmatmul.msk.bf16.vlgmr.msra.gmra.mxu2 %vm423_vm0, %v531_v26 }
 0x27e   : > { %799 = vmatpush.bf16.msra.mxu2 %v2304_v1 }
 0x282   : > { %800 = vmatpush.bf16.msra.mxu2 %v2313_v3 }
 0x300   : > { %v544_v29 = vpop.f32.mrf.mxu2 }
 0x301   : > { %v548_v30 = vadd.f32 %v544_v29, %v451_v28 }
 0x303   : > { %2101 = vtanh.f32 %v548_v30  ;;  %v549_v33 = vmul.f32 0.5, %v548_v30 }
 0x305   : > { %2103 = vtanh.f32 %v549_v33 }
 0x308   : > { %v546_v31 = vpop.f32.mrf.mxu2 }
 0x309   : > { %v2102_v32 = vpop.eup %2101 }
 0x30a   : > { %556 = vrot.lane.b32.xlu2 %v2102_v32, %s2214_s19 }
 0x30b   : > { %v2104_v34 = vpop.eup %2103 }
 0x30c   : > { %v551_v35 = vadd.f32 1.0, %v2104_v34 }
 0x30e   : > { %v552_v36 = vmul.f32 0.5, %v551_v35 }
 0x310   : > { %v554_v39 = vmul.f32 %v552_v36, %v521_v21  ;;  %v2029_v21 = vld [vmem:[%s2640_s0 + $0x10] sm:$0xff] }
 0x311   : > { %1828 = vmatmul.msk.bf16.gmra.mxu0 %vm423_vm0, %v2029_v21 }
 0x364   : > { %v557_v37 = vpop.permute.xlu2 %556 }
 0x365   : > { %v559_v38 = vmul.f32 %v557_v37, %v552_v36 }
 0x367   : > { %561 = vrot.lane.b32.xlu2 %v559_v38, %s2215_s20 }
 0x38e   : > { %v458_v26 = vpop.f32.mrf.mxu0 }
 0x38f   : > { %v459_v27 = vadd.f32 %v2335_v6, %v458_v26 }
 0x3c1   : > { %v562_v40 = vpop.permute.xlu2 %561 }
 0x3c2   : > { %v564_v41 = vadd.f32 %v562_v40, %v554_v39 }
 0x3c4   : > { %2105 = vtanh.f32 %v564_v41 }
 0x3ca   : > { %v2106_v42 = vpop.eup %2105 }
 0x3cb   : > { %567 = vrot.lane.b32.xlu0 %v2106_v42, %s2214_s19 }
 0x43d   : > { %v568_v44 = vpop.permute.xlu0 %567 }
 0x43e   : > { %v570_v45 = vmul.f32 %v568_v44, %v552_v36 }
 0x440   : > { %v571_v46 = vpack.c.bf16 %v570_v45, %v570_v45 }
 0x442   : > { %573 = vrot.lane.b32.xlu1 %v571_v46, %s2215_s20  ;;  %v460_v46 = vpop.f32.mrf.mxu0 }
 0x4b4   : > { %v574_v47 = vpop.permute.xlu1 %573 }
 0x4b5   : > { %1840 = vmatmul.msk.bf16.vlgmr.msra.gmra.mxu3 %vm423_vm0, %v574_v47  ;;  %v461_v47 = vadd.f32 %v2335_v6, %v460_v46 }
 0x4b6   : > { %842 = vmatpush.bf16.msra.mxu3 %v2304_v1 }
 0x4ba   : > { %843 = vmatpush.bf16.msra.mxu3 %v2313_v3 }
 0x538   : > { %v587_v50 = vpop.f32.mrf.mxu3 }
 0x539   : > { %v591_v51 = vadd.f32 %v587_v50, %v454_v49 }
 0x53b   : > { %2107 = vtanh.f32 %v591_v51  ;;  %v592_v54 = vmul.f32 0.5, %v591_v51 }
 0x53d   : > { %2109 = vtanh.f32 %v592_v54 }
 0x540   : > { %v589_v52 = vpop.f32.mrf.mxu3 }
 0x541   : > { %v2108_v53 = vpop.eup %2107 }
 0x542   : > { %599 = vrot.lane.b32.xlu2 %v2108_v53, %s2214_s19 }
 0x543   : > { %v2110_v55 = vpop.eup %2109 }
 0x544   : > { %v594_v56 = vadd.f32 1.0, %v2110_v55 }
 0x546   : > { %v595_v57 = vmul.f32 0.5, %v594_v56 }
 0x548   : > { %v597_v60 = vmul.f32 %v595_v57, %v564_v41 }
 0x59c   : > { %v600_v58 = vpop.permute.xlu2 %599 }
 0x59d   : > { %v602_v59 = vmul.f32 %v600_v58, %v595_v57 }
 0x59f   : > { %604 = vrot.lane.b32.xlu0 %v602_v59, %s2215_s20 }
 0x611   : > { %v605_v61 = vpop.permute.xlu0 %604 }
 0x612   : > { %v607_v62 = vadd.f32 %v605_v61, %v597_v60 }
 0x614   : > { %2111 = vtanh.f32 %v607_v62 }
 0x61a   : > { %v2112_v63 = vpop.eup %2111 }
 0x61b   : > { %610 = vrot.lane.b32.xlu1 %v2112_v63, %s2214_s19 }
 0x68d   : > { %v611_v0 = vpop.permute.xlu1 %610 }
 0x68e   : > { %v613_v2 = vmul.f32 %v611_v0, %v595_v57 }
 0x690   : > { %v614_v4 = vpack.c.bf16 %v613_v2, %v613_v2 }
 0x692   : > { %616 = vrot.lane.b32.xlu2 %v614_v4, %s2215_s20 }
 0x6ec   : > { %v617_v5 = vpop.permute.xlu2 %616 }
 0x6ed   : > { %1841 = vmatmul.msk.bf16.vlgmr.msrb.gmra.mxu1 %vm423_vm0, %v617_v5 }
 0x6ee   : > { %885 = vmatpush.bf16.msrb.mxu1 %v2304_v1 }
 0x6f2   : > { %886 = vmatpush.bf16.msrb.mxu1 %v2313_v3 }
 0x76a   : > { %v630_v9 = vpop.f32.mrf.mxu1 }
 0x76b   : > { %v634_v10 = vadd.f32 %v630_v9, %v456_v8 }
 0x76d   : > { %2113 = vtanh.f32 %v634_v10  ;;  %v635_v13 = vmul.f32 0.5, %v634_v10 }
 0x76f   : > { %2115 = vtanh.f32 %v635_v13 }
 0x772   : > { %v632_v11 = vpop.f32.mrf.mxu1 }
 0x773   : > { %v2114_v12 = vpop.eup %2113 }
 0x774   : > { %642 = vrot.lane.b32.xlu0 %v2114_v12, %s2214_s19 }
 0x775   : > { %v2116_v14 = vpop.eup %2115 }
 0x776   : > { %v637_v15 = vadd.f32 1.0, %v2116_v14 }
 0x778   : > { %v638_v16 = vmul.f32 0.5, %v637_v15 }
 0x77a   : > { %v640_v1 = vmul.f32 %v638_v16, %v607_v62  ;;  %v2030_v62 = vld [vmem:[%s2640_s0 + $0x18] sm:$0xff] }
 0x77b   : > { %1829 = vmatmul.msk.bf16.gmra.mxu0 %vm423_vm0, %v2030_v62 }
 0x7e6   : > { %v643_v17 = vpop.permute.xlu0 %642 }
 0x7e7   : > { %v645_v18 = vmul.f32 %v643_v17, %v638_v16 }
 0x7e9   : > { %647 = vrot.lane.b32.xlu1 %v645_v18, %s2215_s20 }
 0x7f8   : > { %v463_v5 = vpop.f32.mrf.mxu0 }
 0x7f9   : > { %v464_v7 = vadd.f32 %v2335_v6, %v463_v5 }
 0x85b   : > { %v648_v3 = vpop.permute.xlu1 %647 }
 0x85c   : > { %v650_v19 = vadd.f32 %v648_v3, %v640_v1 }
 0x85e   : > { %2117 = vtanh.f32 %v650_v19 }
 0x864   : > { %v2118_v20 = vpop.eup %2117 }
 0x865   : > { %653 = vrot.lane.b32.xlu2 %v2118_v20, %s2214_s19 }
 0x8bf   : > { %v654_v22 = vpop.permute.xlu2 %653 }
 0x8c0   : > { %v656_v23 = vmul.f32 %v654_v22, %v638_v16 }
 0x8c2   : > { %v657_v24 = vpack.c.bf16 %v656_v23, %v656_v23 }
 0x8c4   : > { %659 = vrot.lane.b32.xlu0 %v657_v24, %s2215_s20  ;;  %v465_v24 = vpop.f32.mrf.mxu0 }
 0x936   : > { %v660_v25 = vpop.permute.xlu0 %659 }
 0x937   : > { %1842 = vmatmul.msk.bf16.vlgmr.msrb.gmra.mxu2 %vm423_vm0, %v660_v25  ;;  %v466_v25 = vadd.f32 %v2335_v6, %v465_v24  ;;  %v2043_v24 = vld [vmem:[%s2648_s8 + $0x28] sm:$0xff] }
 0x9ba   : > { %v673_v28 = vpop.f32.mrf.mxu2 }
 0x9bb   : > { %v677_v29 = vadd.f32 %v673_v28, %v459_v27 }
 0x9bd   : > { %2119 = vtanh.f32 %v677_v29  ;;  %v678_v32 = vmul.f32 0.5, %v677_v29 }
 0x9bf   : > { %2121 = vtanh.f32 %v678_v32 }
 0x9c2   : > { %v675_v30 = vpop.f32.mrf.mxu2 }
 0x9c3   : > { %v2120_v31 = vpop.eup %2119 }
 0x9c4   : > { %685 = vrot.lane.b32.xlu1 %v2120_v31, %s2214_s19 }
 0x9c5   : > { %v2122_v33 = vpop.eup %2121 }
 0x9c6   : > { %v680_v34 = vadd.f32 1.0, %v2122_v33 }
 0x9c8   : > { %v681_v35 = vmul.f32 0.5, %v680_v34 }
 0x9ca   : > { %v683_v38 = vmul.f32 %v681_v35, %v650_v19 }
 0xa36   : > { %v686_v36 = vpop.permute.xlu1 %685 }
 0xa37   : > { %v688_v37 = vmul.f32 %v686_v36, %v681_v35 }
 0xa39   : > { %690 = vrot.lane.b32.xlu2 %v688_v37, %s2215_s20 }
 0xa93   : > { %v691_v39 = vpop.permute.xlu2 %690 }
 0xa94   : > { %v693_v40 = vadd.f32 %v691_v39, %v683_v38 }
 0xa96   : > { %2123 = vtanh.f32 %v693_v40 }
 0xa9c   : > { %v2124_v41 = vpop.eup %2123 }
 0xa9d   : > { %696 = vrot.lane.b32.xlu0 %v2124_v41, %s2214_s19 }
 0xb0f   : > { %v697_v42 = vpop.permute.xlu0 %696 }
 0xb10   : > { %v699_v43 = vmul.f32 %v697_v42, %v681_v35 }
 0xb12   : > { %v700_v44 = vpack.c.bf16 %v699_v43, %v699_v43 }
 0xb14   : > { %702 = vrot.lane.b32.xlu1 %v700_v44, %s2215_s20 }
 0xb86   : > { %v703_v45 = vpop.permute.xlu1 %702 }
 0xb87   : > { %1843 = vmatmul.msk.bf16.vlgmr.msrb.gmra.mxu3 %vm423_vm0, %v703_v45 }
 0xc0a   : > { %v716_v48 = vpop.f32.mrf.mxu3 }
 0xc0b   : > { %v720_v49 = vadd.f32 %v716_v48, %v461_v47 }
 0xc0d   : > { %2125 = vtanh.f32 %v720_v49  ;;  %v721_v52 = vmul.f32 0.5, %v720_v49 }
 0xc0f   : > { %2127 = vtanh.f32 %v721_v52 }
 0xc12   : > { %v718_v50 = vpop.f32.mrf.mxu3 }
 0xc13   : > { %v2126_v51 = vpop.eup %2125 }
 0xc14   : > { %728 = vrot.lane.b32.xlu2 %v2126_v51, %s2214_s19 }
 0xc15   : > { %v2128_v53 = vpop.eup %2127 }
 0xc16   : > { %v723_v54 = vadd.f32 1.0, %v2128_v53 }
 0xc18   : > { %v724_v55 = vmul.f32 0.5, %v723_v54 }
 0xc1a   : > { %v726_v58 = vmul.f32 %v724_v55, %v693_v40  ;;  %v2031_v40 = vld [vmem:[%s2640_s0 + $0x20] sm:$0xff] }
 0xc1b   : > { %1830 = vmatmul.msk.bf16.gmra.mxu0 %vm423_vm0, %v2031_v40 }
 0xc6e   : > { %v729_v56 = vpop.permute.xlu2 %728 }
 0xc6f   : > { %v731_v57 = vmul.f32 %v729_v56, %v724_v55 }
 0xc71   : > { %733 = vrot.lane.b32.xlu0 %v731_v57, %s2215_s20 }
 0xc98   : > { %v468_v45 = vpop.f32.mrf.mxu0 }
 0xc99   : > { %v469_v46 = vadd.f32 %v2335_v6, %v468_v45 }
 0xce3   : > { %v734_v59 = vpop.permute.xlu0 %733 }
 0xce4   : > { %v736_v60 = vadd.f32 %v734_v59, %v726_v58 }
 0xce6   : > { %2129 = vtanh.f32 %v736_v60 }
 0xcec   : > { %v2130_v61 = vpop.eup %2129 }
 0xced   : > { %739 = vrot.lane.b32.xlu1 %v2130_v61, %s2214_s19 }
 0xd5f   : > { %v740_v63 = vpop.permute.xlu1 %739 }
 0xd60   : > { %v742_v0 = vmul.f32 %v740_v63, %v724_v55 }
 0xd62   : > { %v743_v2 = vpack.c.bf16 %v742_v0, %v742_v0 }
 0xd64   : > { %745 = vrot.lane.b32.xlu2 %v743_v2, %s2215_s20  ;;  %v470_v2 = vpop.f32.mrf.mxu0 }
 0xdbe   : > { %v746_v4 = vpop.permute.xlu2 %745 }
 0xdbf   : > { %1844 = vmatmul.msk.bf16.vlgmr.msra.gmra.mxu1 %vm423_vm0, %v746_v4  ;;  %v471_v4 = vadd.f32 %v2335_v6, %v470_v2 }
 0xe3c   : > { %v759_v8 = vpop.f32.mrf.mxu1 }
 0xe3d   : > { %v763_v9 = vadd.f32 %v759_v8, %v464_v7 }
 0xe3f   : > { %2131 = vtanh.f32 %v763_v9  ;;  %v764_v12 = vmul.f32 0.5, %v763_v9 }
 0xe41   : > { %2133 = vtanh.f32 %v764_v12 }
 0xe44   : > { %v761_v10 = vpop.f32.mrf.mxu1 }
 0xe45   : > { %v2132_v11 = vpop.eup %2131 }
 0xe46   : > { %771 = vrot.lane.b32.xlu0 %v2132_v11, %s2214_s19 }
 0xe47   : > { %v2134_v13 = vpop.eup %2133 }
 0xe48   : > { %v766_v14 = vadd.f32 1.0, %v2134_v13 }
 0xe4a   : > { %v767_v15 = vmul.f32 0.5, %v766_v14 }
 0xe4c   : > { %v769_v18 = vmul.f32 %v767_v15, %v736_v60 }
 0xeb8   : > { %v772_v16 = vpop.permute.xlu0 %771 }
 0xeb9   : > { %v774_v17 = vmul.f32 %v772_v16, %v767_v15 }
 0xebb   : > { %776 = vrot.lane.b32.xlu1 %v774_v17, %s2215_s20 }
 0xf2d   : > { %v777_v1 = vpop.permute.xlu1 %776 }
 0xf2e   : > { %v779_v3 = vadd.f32 %v777_v1, %v769_v18  ;;  %v2037_v1 = vld [vmem:[%s2646_s6 + $0x8] sm:$0xff] }
 0xf2f   : > { %946 = vmatpush.bf16.msrb.mxu2 %v2037_v1 }
 0xf30   : > { %2135 = vtanh.f32 %v779_v3 }
 0xf36   : > { %v2136_v19 = vpop.eup %2135 }
 0xf37   : > { %782 = vrot.lane.b32.xlu2 %v2136_v19, %s2214_s19 }
 0xf91   : > { %v783_v20 = vpop.permute.xlu2 %782 }
 0xf92   : > { %v785_v21 = vmul.f32 %v783_v20, %v767_v15 }
 0xf94   : > { %v786_v22 = vpack.c.bf16 %v785_v21, %v785_v21 }
 0xf96   : > { %788 = vrot.lane.b32.xlu0 %v786_v22, %s2215_s20  ;;  %v2045_v22 = vld [vmem:[%s2648_s8 + $0x38] sm:$0xff] }
 0xf97   : > { %1021 = vmatpush.bf16.msrb.mxu3 %v2045_v22 }
0x1008   : > { %v789_v23 = vpop.permute.xlu0 %788 }
0x1009   : > { %1845 = vmatmul.msk.bf16.vlgmr.msra.gmra.mxu2 %vm423_vm0, %v789_v23  ;;  %v2044_v23 = vld [vmem:[%s2648_s8 + $0x30] sm:$0xff] }
0x100a   : > { %1022 = vmatpush.bf16.msrb.mxu3 %v2044_v23 }
0x100e   : > { %1023 = vmatpush.bf16.msrb.mxu3 %v2043_v24 }
0x108c   : > { %v802_v26 = vpop.f32.mrf.mxu2 }
0x108d   : > { %v806_v27 = vadd.f32 %v802_v26, %v466_v25  ;;  %v2042_v25 = vld [vmem:[%s2648_s8 + $0x20] sm:$0xff]  ;;  %v2041_v26 = vld [vmem:[%s2648_s8 + $0x18] sm:$0xff] }
0x108e   : > { %1024 = vmatpush.bf16.msrb.mxu3 %v2042_v25 }
0x108f   : > { %2137 = vtanh.f32 %v806_v27  ;;  %v807_v30 = vmul.f32 0.5, %v806_v27  ;;  %v2040_v27 = vld [vmem:[%s2648_s8 + $0x10] sm:$0xff] }
0x1091   : > { %2139 = vtanh.f32 %v807_v30  ;;  %v2038_v30 = vld [vmem:[%s2648_s8] sm:$0xff] }
0x1092   : > { %1025 = vmatpush.bf16.msrb.mxu3 %v2041_v26 }
0x1094   : > { %v804_v28 = vpop.f32.mrf.mxu2 }
0x1095   : > { %v2138_v29 = vpop.eup %2137 }
0x1096   : > { %814 = vrot.lane.b32.xlu1 %v2138_v29, %s2214_s19  ;;  %1026 = vmatpush.bf16.msrb.mxu3 %v2040_v27  ;;  %v2039_v29 = vld [vmem:[%s2648_s8 + $0x8] sm:$0xff] }
0x1097   : > { %v2140_v31 = vpop.eup %2139 }
0x1098   : > { %v809_v32 = vadd.f32 1.0, %v2140_v31  ;;  %v2093_v31 = vld [vmem:[%s2650_s10 + $0x2] ss:$0 sm:$0xff] }
0x109a   : > { %v810_v33 = vmul.f32 0.5, %v809_v32  ;;  %1027 = vmatpush.bf16.msrb.mxu3 %v2039_v29 }
0x109c   : > { %v812_v36 = vmul.f32 %v810_v33, %v779_v3  ;;  %v2036_v3 = vld [vmem:[%s2646_s6] sm:$0xff] }
0x109d   : > { %947 = vmatpush.bf16.msrb.mxu2 %v2036_v3 }
0x109e   : > { %1028 = vmatpush.bf16.msrb.mxu3 %v2038_v30 }
0x1108   : > { %v815_v34 = vpop.permute.xlu1 %814 }
0x1109   : > { %v817_v35 = vmul.f32 %v815_v34, %v810_v33 }
0x110b   : > { %819 = vrot.lane.b32.xlu2 %v817_v35, %s2215_s20 }
0x1165   : > { %v820_v37 = vpop.permute.xlu2 %819 }
0x1166   : > { %v822_v38 = vadd.f32 %v820_v37, %v812_v36  ;;  %v2094_v37 = vld [vmem:[%s2650_s10 + $0x4] ss:$0 sm:$0xff] }
0x1168   : > { %2141 = vtanh.f32 %v822_v38 }
0x116e   : > { %v2142_v39 = vpop.eup %2141 }
0x116f   : > { %825 = vrot.lane.b32.xlu0 %v2142_v39, %s2214_s19 }
0x11e1   : > { %v826_v41 = vpop.permute.xlu0 %825 }
0x11e2   : > { %v828_v42 = vmul.f32 %v826_v41, %v810_v33 }
0x11e4   : > { %v829_v43 = vpack.c.bf16 %v828_v42, %v828_v42 }
0x11e6   : > { %831 = vrot.lane.b32.xlu1 %v829_v43, %s2215_s20 }
0x1258   : > { %v832_v44 = vpop.permute.xlu1 %831 }
0x1259   : > { %1846 = vmatmul.msk.bf16.vlgmr.msra.gmra.mxu3 %vm423_vm0, %v832_v44 }
0x12dc   : > { %v845_v47 = vpop.f32.mrf.mxu3 }
0x12dd   : > { %v849_v48 = vadd.f32 %v845_v47, %v469_v46 }
0x12df   : > { %2143 = vtanh.f32 %v849_v48  ;;  %v850_v51 = vmul.f32 0.5, %v849_v48 }
0x12e1   : > { %2145 = vtanh.f32 %v850_v51 }
0x12e4   : > { %v847_v49 = vpop.f32.mrf.mxu3 }
0x12e5   : > { %v2144_v50 = vpop.eup %2143 }
0x12e6   : > { %857 = vrot.lane.b32.xlu2 %v2144_v50, %s2214_s19 }
0x12e7   : > { %v2146_v52 = vpop.eup %2145 }
0x12e8   : > { %v852_v53 = vadd.f32 1.0, %v2146_v52 }
0x12ea   : > { %v853_v54 = vmul.f32 0.5, %v852_v53 }
0x12ec   : > { %v855_v57 = vmul.f32 %v853_v54, %v822_v38 }
0x1340   : > { %v858_v55 = vpop.permute.xlu2 %857 }
0x1341   : > { %v860_v56 = vmul.f32 %v858_v55, %v853_v54 }
0x1343   : > { %862 = vrot.lane.b32.xlu0 %v860_v56, %s2215_s20 }
0x13b5   : > { %v863_v58 = vpop.permute.xlu0 %862 }
0x13b6   : > { %v865_v59 = vadd.f32 %v863_v58, %v855_v57 }
0x13b8   : > { %2147 = vtanh.f32 %v865_v59 }
0x13be   : > { %v2148_v60 = vpop.eup %2147 }
0x13bf   : > { %868 = vrot.lane.b32.xlu1 %v2148_v60, %s2214_s19 }
0x1431   : > { %v869_v61 = vpop.permute.xlu1 %868 }
0x1432   : > { %v871_v62 = vmul.f32 %v869_v61, %v853_v54 }
0x1434   : > { %v872_v63 = vpack.c.bf16 %v871_v62, %v871_v62 }
0x1436   : > { %874 = vrot.lane.b32.xlu2 %v872_v63, %s2215_s20 }
0x1490   : > { %v875_v0 = vpop.permute.xlu2 %874 }
0x1491   : > { %1847 = vmatmul.msk.bf16.vlgmr.msrb.gmra.mxu1 %vm423_vm0, %v875_v0 }
0x150e   : > { %v888_v5 = vpop.f32.mrf.mxu1 }
0x150f   : > { %v892_v7 = vadd.f32 %v888_v5, %v471_v4 }
0x1511   : > { %2149 = vtanh.f32 %v892_v7  ;;  %v893_v10 = vmul.f32 0.5, %v892_v7 }
0x1513   : > { %2151 = vtanh.f32 %v893_v10 }
0x1516   : > { %v890_v8 = vpop.f32.mrf.mxu1 }
0x1517   : > { %v2150_v9 = vpop.eup %2149 }
0x1518   : > { %900 = vrot.lane.b32.xlu0 %v2150_v9, %s2214_s19 }
0x1519   : > { %v2152_v11 = vpop.eup %2151 }
0x151a   : > { %v895_v12 = vadd.f32 1.0, %v2152_v11 }
0x151c   : > { %v896_v13 = vmul.f32 0.5, %v895_v12 }
0x151e   : > { %v898_v16 = vmul.f32 %v896_v13, %v865_v59 }
0x158a   : > { %v901_v14 = vpop.permute.xlu0 %900 }
0x158b   : > { %v903_v15 = vmul.f32 %v901_v14, %v896_v13 }
0x158d   : > { %905 = vrot.lane.b32.xlu1 %v903_v15, %s2215_s20 }
0x15ff   : > { %v906_v17 = vpop.permute.xlu1 %905 }
0x1600   : > { %v908_v18 = vadd.f32 %v906_v17, %v898_v16 }
0x1602   : > { %2153 = vtanh.f32 %v908_v18 }
0x1608   : > { %v2154_v6 = vpop.eup %2153 }
0x1609   : > { %911 = vrot.lane.b32.xlu2 %v2154_v6, %s2214_s19 }
0x1663   : > { %v912_v19 = vpop.permute.xlu2 %911 }
0x1664   : > { %v914_v20 = vmul.f32 %v912_v19, %v896_v13 }
0x1666   : > { %v915_v21 = vpack.c.bf16 %v914_v20, %v914_v20 }
0x1668   : > { %923 = vrot.lane.b32.xlu0 %v915_v21, %s2215_s20 }
0x16da   : > { %v924_v28 = vpop.permute.xlu0 %923 }
0x16db   : > { %1856 = vmatmul.msk.bf16.vlgmr.msrb.gmra.mxu2 %vm423_vm0, %v924_v28 }
0x175e   : > { %v949_v32 = vpop.f32.mrf.mxu2 }
0x175f   : > { %v950_v33 = vadd.f32 %v2093_v31, %v949_v32 }
0x1761   : > { %v953_v34 = vmax.f32 %v950_v33, 0.0 }
0x1763   : > { %v954_v35 = vpack.c.bf16 %v953_v34, %v953_v34 }
0x1765   : > { %1029 = vmatmul.bf16.vlgmr.msrb.gmra.mxu3 %v954_v35 }
0x1766   : > { %v951_v36 = vpop.f32.mrf.mxu2 }
0x17e8   : > { %v1030_v38 = vpop.f32.mrf.mxu3 }
0x17e9   : > { %v1031_v39 = vadd.f32 %v2094_v37, %v1030_v38 }
0x17eb   : > { %1034 = vst [vmem:[%s2295_s23] sm:$0xff] %v1031_v39 }
0x17f0   : > { %v1032_v40 = vpop.f32.mrf.mxu3 }
0x17f1 PF: > { %p1889_p5 = scmp.ne.s32.totalorder %s2286_s18, 1 }
0x17f2   : > { %s2217_s12 = smov (!%p1889_p5), 64   ;;  %s2218_s13 = smov (!%p1889_p5), 32  }
0x17f3   : > { %1038 = sbr.rel (%p1889_p5) target bundleno = 10976 (0x2ae0), region = 72  ;;  %s2219_s19 = smov (!%p1889_p5), 96  }
0x17f8   : > { %v2050_v41 = vld [vmem:[%s2644_s4] sm:$0xff]  ;;  %v2052_v42 = vld [vmem:[%s2645_s5 + $0x8] sm:$0xff]  ;;  %vm1077_vm1 = vcmask 130048   ;;  %v2216_v45 = vmov 0   ;;  %vm1135_vm2 = vcmask 261120   ;;  %vm1501_vm3 = vcmask 523264  }
0x17f9   : > { %v2046_v43 = vld [vmem:[%s2641_s1] sm:$0xff]  ;;  %1097 = vmatpush.bf16.msra.mxu0 %v2050_v41  ;;  %1145 = vmatpush.bf16.msra.mxu2 %v2052_v42  ;;  %v2047_v21 = vld [vmem:[%s2641_s1 + $0x8] sm:$0xff]  ;;  %vm1504_vm4 = vcmask 785408  }
0x17fa   : > { %v2051_v44 = vld [vmem:[%s2645_s5] sm:$0xff]  ;;  %1235 = vmatpush.bf16.msra.mxu3 %v2052_v42  ;;  %1280 = vmatpush.bf16.msra.mxu1 %v2052_v42 }
0x17fb   : > { %v2473_v46 = vld [vmem:[%s2650_s10 + $0x1] ss:$0 sm:$0xff] }
0x17fc   : > { %1910 = vmatmul.msk.bf16.vlgmr.msra.gmra.mxu0 %vm1077_vm1, %v2046_v43 }
0x17fd   : > { %1146 = vmatpush.bf16.msra.mxu2 %v2051_v44 }
0x17fe   : > { %1236 = vmatpush.bf16.msra.mxu3 %v2051_v44  ;;  %1281 = vmatpush.bf16.msra.mxu1 %v2051_v44 }
0x1800   : > { %1147 = vmatmul.bf16.vlgmr.msra.gmra.mxu2 %v2216_v45 }
0x1801   : > { %1190 = vmatpush.bf16.msrb.mxu2 %v2052_v42 }
0x1802   : > { %1370 = vmatpush.bf16.msrb.mxu3 %v2052_v42  ;;  %1415 = vmatpush.bf16.msrb.mxu1 %v2052_v42 }
0x1805   : > { %1191 = vmatpush.bf16.msrb.mxu2 %v2051_v44 }
0x1806   : > { %1371 = vmatpush.bf16.msrb.mxu3 %v2051_v44  ;;  %1416 = vmatpush.bf16.msrb.mxu1 %v2051_v44 }
0x1809   : > { %1325 = vmatpush.bf16.msra.mxu2 %v2052_v42 }
0x180c   : > { %1911 = vmatmul.msk.bf16.gmra.mxu0 %vm1077_vm1, %v2047_v21 }
0x180d   : > { %1326 = vmatpush.bf16.msra.mxu2 %v2051_v44 }
0x1879   : > { %v1099_v47 = vpop.f32.mrf.mxu0 }
0x187a   : > { %v1100_v48 = vadd.f32 %v2473_v46, %v1099_v47 }
0x1881   : > { %v1101_v8 = vpop.f32.mrf.mxu0 }
0x1882   : > { %v1102_v9 = vadd.f32 %v2473_v46, %v1101_v8 }
0x1883   : > { %v1148_v49 = vpop.f32.mrf.mxu2 }
0x1884   : > { %v1152_v50 = vadd.f32 %v1148_v49, %v1100_v48 }
0x1886   : > { %2157 = vtanh.f32 %v1152_v50  ;;  %v1153_v53 = vmul.f32 0.5, %v1152_v50 }
0x1888   : > { %2159 = vtanh.f32 %v1153_v53 }
0x1889   : > { %v1104_v28 = vpop.f32.mrf.mxu0 }
0x188a   : > { %v1105_v29 = vadd.f32 %v2473_v46, %v1104_v28 }
0x188b   : > { %v1150_v51 = vpop.f32.mrf.mxu2 }
0x188c   : > { %v2158_v52 = vpop.eup %2157 }
0x188d   : > { %1160 = vrot.lane.b32.xlu0 %v2158_v52, %s2217_s12 }
0x188e   : > { %v2160_v54 = vpop.eup %2159 }
0x188f   : > { %v1155_v55 = vadd.f32 1.0, %v2160_v54 }
0x1891   : > { %v1156_v56 = vmul.f32 0.5, %v1155_v55  ;;  %v1106_v51 = vpop.f32.mrf.mxu0 }
0x1892   : > { %v1107_v52 = vadd.f32 %v2473_v46, %v1106_v51 }
0x1893   : > { %v1158_v59 = vmul.f32 0.0, %v1156_v56 }
0x18ff   : > { %v1161_v57 = vpop.permute.xlu0 %1160 }
0x1900   : > { %v1163_v58 = vmul.f32 %v1161_v57, %v1156_v56 }
0x1902   : > { %1165 = vrot.lane.b32.xlu0 %v1163_v58, %s2218_s13 }
0x1974   : > { %v1166_v60 = vpop.permute.xlu0 %1165 }
0x1975   : > { %v1168_v61 = vadd.f32 %v1166_v60, %v1158_v59 }
0x1977   : > { %2161 = vtanh.f32 %v1168_v61 }
0x197d   : > { %v2162_v62 = vpop.eup %2161 }
0x197e   : > { %1171 = vrot.lane.b32.xlu1 %v2162_v62, %s2217_s12 }
0x19f0   : > { %v1172_v63 = vpop.permute.xlu1 %1171 }
0x19f1   : > { %v1174_v0 = vmul.f32 %v1172_v63, %v1156_v56 }
0x19f3   : > { %v1175_v2 = vpack.c.bf16 %v1174_v0, %v1174_v0 }
0x19f5   : > { %v1177_v4 = vunpack.c.l.b16 %v1175_v2 }
0x19f7   : > { %v1178_v5 = vpack.c.b16 %v1177_v4, %v1177_v4 }
0x19f9   : > { %1179 = vrot.lane.b32.xlu1 %v1178_v5, %s2218_s13  ;;  %v2048_v5 = vld [vmem:[%s2641_s1 + $0x10] sm:$0xff] }
0x19fa   : > { %1912 = vmatmul.msk.bf16.gmra.mxu0 %vm1077_vm1, %v2048_v5 }
0x1a6b   : > { %v2480_v7 = vpop.permute.xlu1 %1179 }
0x1a6c   : > { %1922 = vmatmul.msk.bf16.vlgmr.msrb.gmra.mxu2 %vm1135_vm2, %v2480_v7 }
0x1a6d   : > { %1460 = vmatpush.bf16.msrb.mxu2 %v2052_v42 }
0x1a71   : > { %1461 = vmatpush.bf16.msrb.mxu2 %v2051_v44 }
0x1aef   : > { %v1193_v10 = vpop.f32.mrf.mxu2 }
0x1af0   : > { %v1197_v11 = vadd.f32 %v1193_v10, %v1102_v9 }
0x1af2   : > { %2163 = vtanh.f32 %v1197_v11  ;;  %v1198_v14 = vmul.f32 0.5, %v1197_v11 }
0x1af4   : > { %2165 = vtanh.f32 %v1198_v14  ;;  %v1109_v14 = vpop.f32.mrf.mxu0 }
0x1af7   : > { %v1195_v12 = vpop.f32.mrf.mxu2 }
0x1af8   : > { %v2164_v13 = vpop.eup %2163 }
0x1af9   : > { %1205 = vrot.lane.b32.xlu2 %v2164_v13, %s2217_s12 }
0x1afa   : > { %v2166_v15 = vpop.eup %2165 }
0x1afb   : > { %v1200_v16 = vadd.f32 1.0, %v2166_v15  ;;  %v1110_v15 = vadd.f32 %v2473_v46, %v1109_v14 }
0x1afd   : > { %v1201_v17 = vmul.f32 0.5, %v1200_v16 }
0x1aff   : > { %v1203_v1 = vmul.f32 %v1201_v17, %v1168_v61 }
0x1b53   : > { %v1206_v18 = vpop.permute.xlu2 %1205 }
0x1b54   : > { %v1208_v6 = vmul.f32 %v1206_v18, %v1201_v17 }
0x1b56   : > { %1210 = vrot.lane.b32.xlu2 %v1208_v6, %s2218_s13 }
0x1bb0   : > { %v1211_v3 = vpop.permute.xlu2 %1210 }
0x1bb1   : > { %v1213_v19 = vadd.f32 %v1211_v3, %v1203_v1 }
0x1bb3   : > { %2167 = vtanh.f32 %v1213_v19 }
0x1bb9   : > { %v2168_v20 = vpop.eup %2167 }
0x1bba   : > { %1216 = vrot.lane.b32.xlu0 %v2168_v20, %s2217_s12 }
0x1c2c   : > { %v1217_v22 = vpop.permute.xlu0 %1216 }
0x1c2d   : > { %v1219_v23 = vmul.f32 %v1217_v22, %v1201_v17 }
0x1c2f   : > { %v1220_v24 = vpack.c.bf16 %v1219_v23, %v1219_v23 }
0x1c31   : > { %v1222_v25 = vunpack.c.l.b16 %v1220_v24 }
0x1c33   : > { %v2492_v26 = vpack.c.b16 %v1222_v25, %v1222_v25 }
0x1c35   : > { %1224 = vrot.lane.b32.xlu1 %v2492_v26, %s2218_s13 }
0x1ca7   : > { %v1225_v27 = vpop.permute.xlu1 %1224 }
0x1ca8   : > { %1923 = vmatmul.msk.bf16.vlgmr.msra.gmra.mxu3 %vm1135_vm2, %v1225_v27 }
0x1d2b   : > { %v1238_v30 = vpop.f32.mrf.mxu3 }
0x1d2c   : > { %v1242_v31 = vadd.f32 %v1238_v30, %v1105_v29 }
0x1d2e   : > { %2169 = vtanh.f32 %v1242_v31  ;;  %v1243_v34 = vmul.f32 0.5, %v1242_v31 }
0x1d30   : > { %2171 = vtanh.f32 %v1243_v34  ;;  %v1111_v34 = vpop.f32.mrf.mxu0 }
0x1d33   : > { %v1240_v32 = vpop.f32.mrf.mxu3 }
0x1d34   : > { %v2170_v33 = vpop.eup %2169 }
0x1d35   : > { %1250 = vrot.lane.b32.xlu2 %v2170_v33, %s2217_s12 }
0x1d36   : > { %v2172_v35 = vpop.eup %2171 }
0x1d37   : > { %v1245_v36 = vadd.f32 1.0, %v2172_v35  ;;  %v1112_v35 = vadd.f32 %v2473_v46, %v1111_v34 }
0x1d39   : > { %v1246_v37 = vmul.f32 0.5, %v1245_v36 }
0x1d3b   : > { %v1248_v40 = vmul.f32 %v1246_v37, %v1213_v19 }
0x1d8f   : > { %v1251_v38 = vpop.permute.xlu2 %1250 }
0x1d90   : > { %v1253_v39 = vmul.f32 %v1251_v38, %v1246_v37 }
0x1d92   : > { %1255 = vrot.lane.b32.xlu0 %v1253_v39, %s2218_s13 }
0x1e04   : > { %v1256_v41 = vpop.permute.xlu0 %1255 }
0x1e05   : > { %v1258_v42 = vadd.f32 %v1256_v41, %v1248_v40 }
0x1e07   : > { %2173 = vtanh.f32 %v1258_v42 }
0x1e0d   : > { %v2174_v43 = vpop.eup %2173 }
0x1e0e   : > { %1261 = vrot.lane.b32.xlu1 %v2174_v43, %s2217_s12 }
0x1e80   : > { %v1262_v44 = vpop.permute.xlu1 %1261 }
0x1e81   : > { %v1264_v45 = vmul.f32 %v1262_v44, %v1246_v37 }
0x1e83   : > { %v1265_v47 = vpack.c.bf16 %v1264_v45, %v1264_v45 }
0x1e85   : > { %v1267_v48 = vunpack.c.l.b16 %v1265_v47 }
0x1e87   : > { %v2501_v49 = vpack.c.b16 %v1267_v48, %v1267_v48 }
0x1e89   : > { %1269 = vrot.lane.b32.xlu2 %v2501_v49, %s2218_s13 }
0x1ee3   : > { %v1270_v50 = vpop.permute.xlu2 %1269 }
0x1ee4   : > { %1924 = vmatmul.msk.bf16.vlgmr.msra.gmra.mxu1 %vm1135_vm2, %v1270_v50 }
0x1f61   : > { %v1283_v53 = vpop.f32.mrf.mxu1 }
0x1f62   : > { %v1287_v54 = vadd.f32 %v1283_v53, %v1107_v52  ;;  %v2049_v52 = vld [vmem:[%s2641_s1 + $0x18] sm:$0xff] }
0x1f63   : > { %1913 = vmatmul.msk.bf16.gmra.mxu0 %vm1077_vm1, %v2049_v52  ;;  %v2063_v52 = vld [vmem:[%s2647_s7 + $0x50] sm:$0xff] }
0x1f64   : > { %2175 = vtanh.f32 %v1287_v54  ;;  %v1288_v57 = vmul.f32 0.5, %v1287_v54 }
0x1f66   : > { %2177 = vtanh.f32 %v1288_v57 }
0x1f69   : > { %v1285_v55 = vpop.f32.mrf.mxu1 }
0x1f6a   : > { %v2176_v56 = vpop.eup %2175 }
0x1f6b   : > { %1295 = vrot.lane.b32.xlu0 %v2176_v56, %s2217_s12 }
0x1f6c   : > { %v2178_v58 = vpop.eup %2177 }
0x1f6d   : > { %v1290_v59 = vadd.f32 1.0, %v2178_v58 }
0x1f6f   : > { %v1291_v60 = vmul.f32 0.5, %v1290_v59 }
0x1f71   : > { %v1293_v63 = vmul.f32 %v1291_v60, %v1258_v42 }
0x1fdd   : > { %v1296_v61 = vpop.permute.xlu0 %1295 }
0x1fde   : > { %v1298_v62 = vmul.f32 %v1296_v61, %v1291_v60 }
0x1fe0   : > { %1300 = vrot.lane.b32.xlu1 %v1298_v62, %s2218_s13  ;;  %v1114_v59 = vpop.f32.mrf.mxu0 }
0x2052   : > { %v1301_v0 = vpop.permute.xlu1 %1300 }
0x2053   : > { %v1303_v2 = vadd.f32 %v1301_v0, %v1293_v63 }
0x2055   : > { %2179 = vtanh.f32 %v1303_v2 }
0x205b   : > { %v2180_v4 = vpop.eup %2179 }
0x205c   : > { %1306 = vrot.lane.b32.xlu2 %v2180_v4, %s2217_s12 }
0x20b6   : > { %v1307_v8 = vpop.permute.xlu2 %1306 }
0x20b7   : > { %v1309_v9 = vmul.f32 %v1307_v8, %v1291_v60  ;;  %v1115_v60 = vadd.f32 %v2473_v46, %v1114_v59  ;;  %v2074_v59 = vld [vmem:[%s2649_s9 + $0x28] sm:$0xff] }
0x20b9   : > { %v2514_v10 = vpack.c.bf16 %v1309_v9, %v1309_v9 }
0x20bb   : > { %v1312_v11 = vunpack.c.l.b16 %v2514_v10 }
0x20bd   : > { %v1313_v12 = vpack.c.b16 %v1312_v11, %v1312_v11 }
0x20bf   : > { %1314 = vrot.lane.b32.xlu0 %v1313_v12, %s2218_s13 }
0x2131   : > { %v1315_v13 = vpop.permute.xlu0 %1314 }
0x2132   : > { %1925 = vmatmul.msk.bf16.vlgmr.msra.gmra.mxu2 %vm1135_vm2, %v1315_v13 }
0x21b5   : > { %v1328_v16 = vpop.f32.mrf.mxu2 }
0x21b6   : > { %v1332_v17 = vadd.f32 %v1328_v16, %v1110_v15 }
0x21b8   : > { %2181 = vtanh.f32 %v1332_v17  ;;  %v1333_v1 = vmul.f32 0.5, %v1332_v17 }
0x21ba   : > { %2183 = vtanh.f32 %v1333_v1 }
0x21bd   : > { %v1330_v18 = vpop.f32.mrf.mxu2 }
0x21be   : > { %v2182_v6 = vpop.eup %2181 }
0x21bf   : > { %1340 = vrot.lane.b32.xlu1 %v2182_v6, %s2217_s12 }
0x21c0   : > { %v2184_v3 = vpop.eup %2183 }
0x21c1   : > { %v1335_v19 = vadd.f32 1.0, %v2184_v3 }
0x21c3   : > { %v1336_v20 = vmul.f32 0.5, %v1335_v19  ;;  %v2060_v19 = vld [vmem:[%s2647_s7 + $0x38] sm:$0xff] }
0x21c4   : > { %1645 = vmatpush.bf16.msra.mxu3 %v2060_v19 }
0x21c5   : > { %v1338_v23 = vmul.f32 %v1336_v20, %v1303_v2 }
0x2231   : > { %v1341_v21 = vpop.permute.xlu1 %1340 }
0x2232   : > { %v1343_v22 = vmul.f32 %v1341_v21, %v1336_v20  ;;  %v2059_v21 = vld [vmem:[%s2647_s7 + $0x30] sm:$0xff] }
0x2233   : > { %1646 = vmatpush.bf16.msra.mxu3 %v2059_v21 }
0x2234   : > { %1345 = vrot.lane.b32.xlu2 %v1343_v22, %s2218_s13 }
0x228e   : > { %v1346_v24 = vpop.permute.xlu2 %1345 }
0x228f   : > { %v1348_v25 = vadd.f32 %v1346_v24, %v1338_v23 }
0x2291   : > { %2185 = vtanh.f32 %v1348_v25 }
0x2297   : > { %v2186_v27 = vpop.eup %2185 }
0x2298   : > { %1351 = vrot.lane.b32.xlu0 %v2186_v27, %s2217_s12 }
0x230a   : > { %v1352_v28 = vpop.permute.xlu0 %1351 }
0x230b   : > { %v1354_v29 = vmul.f32 %v1352_v28, %v1336_v20  ;;  %v1116_v20 = vpop.f32.mrf.mxu0  ;;  %v2056_v28 = vld [vmem:[%s2647_s7 + $0x18] sm:$0xff] }
0x230c   : > { %v1117_v22 = vadd.f32 %v2473_v46, %v1116_v20 }
0x230d   : > { %v1355_v30 = vpack.c.bf16 %v1354_v29, %v1354_v29  ;;  %v2055_v29 = vld [vmem:[%s2647_s7 + $0x10] sm:$0xff] }
0x230f   : > { %v1357_v31 = vunpack.c.l.b16 %v1355_v30  ;;  %v2054_v30 = vld [vmem:[%s2647_s7 + $0x8] sm:$0xff] }
0x2311   : > { %v1358_v32 = vpack.c.b16 %v1357_v31, %v1357_v31  ;;  %v2053_v31 = vld [vmem:[%s2647_s7] sm:$0xff] }
0x2313   : > { %1359 = vrot.lane.b32.xlu1 %v1358_v32, %s2218_s13 }
0x2385   : > { %v2524_v33 = vpop.permute.xlu1 %1359 }
0x2386   : > { %1926 = vmatmul.msk.bf16.vlgmr.msrb.gmra.mxu3 %vm1135_vm2, %v2524_v33 }
0x2409   : > { %v1373_v36 = vpop.f32.mrf.mxu3 }
0x240a   : > { %v1377_v37 = vadd.f32 %v1373_v36, %v1112_v35 }
0x240c   : > { %2187 = vtanh.f32 %v1377_v37  ;;  %v1378_v40 = vmul.f32 0.5, %v1377_v37 }
0x240e   : > { %2189 = vtanh.f32 %v1378_v40 }
0x2411   : > { %v1375_v38 = vpop.f32.mrf.mxu3 }
0x2412   : > { %v2188_v39 = vpop.eup %2187 }
0x2413   : > { %1385 = vrot.lane.b32.xlu2 %v2188_v39, %s2217_s12 }
0x2414   : > { %v2190_v41 = vpop.eup %2189 }
0x2415   : > { %v1380_v42 = vadd.f32 1.0, %v2190_v41 }
0x2417   : > { %v1381_v43 = vmul.f32 0.5, %v1380_v42 }
0x2419   : > { %v1383_v47 = vmul.f32 %v1381_v43, %v1348_v25  ;;  %v2057_v25 = vld [vmem:[%s2647_s7 + $0x20] sm:$0xff] }
0x246d   : > { %v1386_v44 = vpop.permute.xlu2 %1385 }
0x246e   : > { %v1388_v45 = vmul.f32 %v1386_v44, %v1381_v43 }
0x2470   : > { %1390 = vrot.lane.b32.xlu0 %v1388_v45, %s2218_s13 }
0x24e2   : > { %v1391_v48 = vpop.permute.xlu0 %1390 }
0x24e3   : > { %v1393_v50 = vadd.f32 %v1391_v48, %v1383_v47 }
0x24e5   : > { %2191 = vtanh.f32 %v1393_v50 }
0x24eb   : > { %v2192_v51 = vpop.eup %2191 }
0x24ec   : > { %1396 = vrot.lane.b32.xlu1 %v2192_v51, %s2217_s12  ;;  %v2064_v51 = vld [vmem:[%s2647_s7 + $0x58] sm:$0xff] }
0x255e   : > { %v1397_v53 = vpop.permute.xlu1 %1396 }
0x255f   : > { %v1399_v54 = vmul.f32 %v1397_v53, %v1381_v43  ;;  %v2068_v43 = vld [vmem:[%s2647_s7 + $0x78] sm:$0xff]  ;;  %v2062_v53 = vld [vmem:[%s2647_s7 + $0x48] sm:$0xff] }
0x2560   : > { %1658 = vmatpush.bf16.msrb.mxu0 %v2068_v43 }
0x2561   : > { %v1400_v55 = vpack.c.bf16 %v1399_v54, %v1399_v54  ;;  %v2061_v54 = vld [vmem:[%s2647_s7 + $0x40] sm:$0xff] }
0x2563   : > { %v1402_v56 = vunpack.c.l.b16 %v1400_v55 }
0x2565   : > { %v1403_v57 = vpack.c.b16 %v1402_v56, %v1402_v56 }
0x2567   : > { %1404 = vrot.lane.b32.xlu2 %v1403_v57, %s2218_s13 }
0x25c1   : > { %v1405_v58 = vpop.permute.xlu2 %1404 }
0x25c2   : > { %1927 = vmatmul.msk.bf16.vlgmr.msrb.gmra.mxu1 %vm1135_vm2, %v1405_v58  ;;  %v2075_v58 = vld [vmem:[%s2649_s9 + $0x30] sm:$0xff] }
0x263f   : > { %v1418_v61 = vpop.f32.mrf.mxu1 }
0x2640   : > { %v1422_v62 = vadd.f32 %v1418_v61, %v1115_v60  ;;  %v2073_v60 = vld [vmem:[%s2649_s9 + $0x20] sm:$0xff]  ;;  %v2072_v61 = vld [vmem:[%s2649_s9 + $0x18] sm:$0xff] }
0x2642   : > { %2193 = vtanh.f32 %v1422_v62  ;;  %v1423_v2 = vmul.f32 0.5, %v1422_v62  ;;  %v2071_v62 = vld [vmem:[%s2649_s9 + $0x10] sm:$0xff] }
0x2644   : > { %2195 = vtanh.f32 %v1423_v2 }
0x2647   : > { %v1420_v63 = vpop.f32.mrf.mxu1 }
0x2648   : > { %v2194_v0 = vpop.eup %2193 }
0x2649   : > { %1430 = vrot.lane.b32.xlu0 %v2194_v0, %s2217_s12 }
0x264a   : > { %v2196_v4 = vpop.eup %2195 }
0x264b   : > { %v1425_v5 = vadd.f32 1.0, %v2196_v4 }
0x264d   : > { %v1426_v8 = vmul.f32 0.5, %v1425_v5 }
0x264f   : > { %v1428_v12 = vmul.f32 %v1426_v8, %v1393_v50  ;;  %v2065_v50 = vld [vmem:[%s2647_s7 + $0x60] sm:$0xff] }
0x26bb   : > { %v1431_v9 = vpop.permute.xlu0 %1430 }
0x26bc   : > { %v1433_v11 = vmul.f32 %v1431_v9, %v1426_v8 }
0x26be   : > { %1435 = vrot.lane.b32.xlu1 %v1433_v11, %s2218_s13 }
0x2730   : > { %v1436_v13 = vpop.permute.xlu1 %1435 }
0x2731   : > { %v1438_v14 = vadd.f32 %v1436_v13, %v1428_v12  ;;  %v2070_v12 = vld [vmem:[%s2649_s9 + $0x8] sm:$0xff]  ;;  %v2069_v13 = vld [vmem:[%s2649_s9] sm:$0xff] }
0x2733   : > { %2197 = vtanh.f32 %v1438_v14 }
0x2739   : > { %v2198_v15 = vpop.eup %2197 }
0x273a   : > { %1441 = vrot.lane.b32.xlu2 %v2198_v15, %s2217_s12 }
0x2794   : > { %v1442_v16 = vpop.permute.xlu2 %1441 }
0x2795   : > { %v1444_v17 = vmul.f32 %v1442_v16, %v1426_v8 }
0x2797   : > { %v1445_v18 = vpack.c.bf16 %v1444_v17, %v1444_v17 }
0x2799   : > { %v1447_v6 = vunpack.c.l.b16 %v1445_v18 }
0x279b   : > { %v1448_v1 = vpack.c.b16 %v1447_v6, %v1447_v6 }
0x279d   : > { %1449 = vrot.lane.b32.xlu0 %v1448_v1, %s2218_s13 }
0x27a5   : > { %1491 = vrot.lane.b32.xlu0 %v2492_v26, %s2217_s12  ;;  %v2058_v26 = vld [vmem:[%s2647_s7 + $0x28] sm:$0xff] }
0x27a6   : > { %1647 = vmatpush.bf16.msra.mxu3 %v2058_v26 }
0x27aa   : > { %1648 = vmatpush.bf16.msra.mxu3 %v2057_v25 }
0x27ad   : > { %1495 = vrot.lane.b32.xlu0 %v1403_v57, %s2217_s12  ;;  %v2076_v57 = vld [vmem:[%s2649_s9 + $0x38] sm:$0xff] }
0x27ae   : > { %1649 = vmatpush.bf16.msra.mxu3 %v2056_v28  ;;  %1737 = vmatpush.bf16.msra.mxu1 %v2076_v57 }
0x27b2   : > { %1650 = vmatpush.bf16.msra.mxu3 %v2055_v29  ;;  %1738 = vmatpush.bf16.msra.mxu1 %v2075_v58 }
0x27b6   : > { %1651 = vmatpush.bf16.msra.mxu3 %v2054_v30  ;;  %1739 = vmatpush.bf16.msra.mxu1 %v2074_v59 }
0x27ba   : > { %1652 = vmatpush.bf16.msra.mxu3 %v2053_v31  ;;  %1740 = vmatpush.bf16.msra.mxu1 %v2073_v60 }
0x27be   : > { %1741 = vmatpush.bf16.msra.mxu1 %v2072_v61 }
0x27c2   : > { %1742 = vmatpush.bf16.msra.mxu1 %v2071_v62 }
0x27c6   : > { %1743 = vmatpush.bf16.msra.mxu1 %v2070_v12 }
0x27ca   : > { %1744 = vmatpush.bf16.msra.mxu1 %v2069_v13 }
0x280f   : > { %v1450_v3 = vpop.permute.xlu0 %1449 }
0x2810   : > { %1928 = vmatmul.msk.bf16.vlgmr.msrb.gmra.mxu2 %vm1135_vm2, %v1450_v3 }
0x2893   : > { %v1463_v23 = vpop.f32.mrf.mxu2 }
0x2894   : > { %v1467_v24 = vadd.f32 %v1463_v23, %v1117_v22 }
0x2896   : > { %2199 = vtanh.f32 %v1467_v24  ;;  %v1468_v32 = vmul.f32 0.5, %v1467_v24 }
0x2898   : > { %2201 = vtanh.f32 %v1468_v32 }
0x289b   : > { %v1465_v27 = vpop.f32.mrf.mxu2 }
0x289c   : > { %v2200_v46 = vpop.eup %2199 }
0x289d   : > { %1475 = vrot.lane.b32.xlu1 %v2200_v46, %s2217_s12 }
0x289e   : > { %v2202_v34 = vpop.eup %2201 }
0x289f   : > { %v1470_v35 = vadd.f32 1.0, %v2202_v34 }
0x28a1   : > { %v1471_v36 = vmul.f32 0.5, %v1470_v35 }
0x28a3   : > { %v1473_v44 = vmul.f32 %v1471_v36, %v1438_v14 }
0x28a5   : > { %1493 = vrot.lane.b32.xlu1 %v2501_v49, %s2219_s19  ;;  %v1492_v49 = vpop.permute.xlu0 %1491 }
0x28a6   : > { %v1500_v39 = vsel %vm1135_vm2, %v2480_v7, %v1492_v49  ;;  %v2067_v7 = vld [vmem:[%s2647_s7 + $0x70] sm:$0xff] }
0x28a7   : > { %1659 = vmatpush.bf16.msrb.mxu0 %v2067_v7 }
0x28ad   : > { %1497 = vrot.lane.b32.xlu1 %v1448_v1, %s2219_s19  ;;  %v1496_v63 = vpop.permute.xlu0 %1495 }
0x28ae   : > { %v1509_v5 = vsel %vm1135_vm2, %v2524_v33, %v1496_v63  ;;  %v2156_v33 = vld [vmem:[%s2650_s10 + $0x3] ss:$0 sm:$0xff] }
0x290f   : > { %v1476_v37 = vpop.permute.xlu1 %1475 }
0x2910   : > { %v1478_v38 = vmul.f32 %v1476_v37, %v1471_v36 }
0x2912   : > { %1480 = vrot.lane.b32.xlu2 %v1478_v38, %s2218_s13 }
0x2917   : > { %v1494_v40 = vpop.permute.xlu1 %1493 }
0x2918   : > { %v1503_v41 = vsel %vm1501_vm3, %v1500_v39, %v1494_v40 }
0x2919   : > { %v1506_v42 = vsel %vm1504_vm4, %v1503_v41, %v2514_v10  ;;  %v2066_v10 = vld [vmem:[%s2647_s7 + $0x68] sm:$0xff] }
0x291a   : > { %1653 = vmatmul.bf16.vlgmr.msra.gmra.mxu3 %v1506_v42  ;;  %1660 = vmatpush.bf16.msrb.mxu0 %v2066_v10 }
0x291e   : > { %1661 = vmatpush.bf16.msrb.mxu0 %v2065_v50 }
0x291f   : > { %v1498_v2 = vpop.permute.xlu1 %1497 }
0x2920   : > { %v1511_v9 = vsel %vm1501_vm3, %v1509_v5, %v1498_v2 }
0x2922   : > { %1662 = vmatpush.bf16.msrb.mxu0 %v2064_v51 }
0x2926   : > { %1663 = vmatpush.bf16.msrb.mxu0 %v2063_v52 }
0x292a   : > { %1664 = vmatpush.bf16.msrb.mxu0 %v2062_v53 }
0x292e   : > { %1665 = vmatpush.bf16.msrb.mxu0 %v2061_v54 }
0x296c   : > { %v1481_v45 = vpop.permute.xlu2 %1480 }
0x296d   : > { %v1483_v47 = vadd.f32 %v1481_v45, %v1473_v44 }
0x296f   : > { %2203 = vtanh.f32 %v1483_v47 }
0x2975   : > { %v2204_v48 = vpop.eup %2203 }
0x2976   : > { %1486 = vrot.lane.b32.xlu2 %v2204_v48, %s2217_s12 }
0x299d   : > { %v1654_v55 = vpop.f32.mrf.mxu3 }
0x299e   : > { %v1655_v14 = vadd.f32 %v2156_v33, %v1654_v55 }
0x29a5   : > { %v1656_v56 = vpop.f32.mrf.mxu3 }
0x29d0   : > { %v1487_v0 = vpop.permute.xlu2 %1486 }
0x29d1   : > { %v1489_v4 = vmul.f32 %v1487_v0, %v1471_v36 }
0x29d3   : > { %v1490_v8 = vpack.c.bf16 %v1489_v4, %v1489_v4 }
0x29d5   : > { %v1513_v11 = vsel %vm1504_vm4, %v1511_v9, %v1490_v8 }
0x29d6   : > { %1666 = vmatmul.bf16.vlgmr.msrb.gmra.mxu0 %v1513_v11 }
0x2a53   : > { %v1667_v15 = vpop.f32.mrf.mxu0 }
0x2a54   : > { %v1668_v16 = vadd.f32 %v1667_v15, %v1655_v14 }
0x2a56   : > { %v1671_v17 = vmax.f32 %v1668_v16, 0.0 }
0x2a58   : > { %v1672_v18 = vpack.c.bf16 %v1671_v17, %v1671_v17 }
0x2a5a   : > { %1745 = vmatmul.bf16.vlgmr.msra.gmra.mxu1 %v1672_v18 }
0x2a5b   : > { %v1669_v6 = vpop.f32.mrf.mxu0 }
0x2ad7   : > { %v1746_v1 = vpop.f32.mrf.mxu1 }
0x2ad8   : > { %1750 = vst [vmem:[%s2295_s23] sm:$0xff] %v1746_v1 }
0x2adf   : > { %v1748_v3 = vpop.f32.mrf.mxu1 }
0x2ae0 PF: > { %s21_s17 = sadd.s32 1, %s2211_s17  }
0x2ae1   : > { %p18_p6 = scmp.ge.s32.totalorder %s21_s17, 4  }
0x2ae3   :  { %20 = sbr.rel (!%p18_p6) target bundleno = 1 (0x1), region = 99 }

</bundles_post_ra>
